<compile_context>
chip_gen: v5e
topology: v5e:2x2
jax: 0.10.0
libtpu: 0.0.40
codegen_flags: <defaults>
</compile_context>

<pallas_src>
import functools

import jax
import jax.numpy as jnp
import numpy as np
from jax.experimental import pallas as pl
from jax.experimental.pallas import tpu as pltpu

# ----- small, module-consistent config -----
N_BATCH = 2        # PyTorch example uses 64
SEQ_LEN = 8        # PyTorch example uses 10
EMBED   = 128      # PyTorch example uses 512
HEADS   = 8
HEAD_D  = EMBED // HEADS
assert HEAD_D * HEADS == EMBED


def _mha_kernel(xq_ref, xk_ref, xv_ref,
                wqbd_ref, wkbd_ref, wvbd_ref, wot_ref, bo_ref,
                o_ref, ctx_ref, *, l_actual, heads):
    """One grid step = one batch-block of `bb` batch elements.

    xq/xk/xv_ref : (bb, Lp, E) raw inputs, Lp = L padded to a multiple of 8
    wqbd/wkbd/wvbd_ref : (E, E) block-diagonal, pre-transposed projection weights
    wot_ref      : (E, E) fc_out weight, already transposed (y = x @ wo.T == x @ wo_t)
    bo_ref       : (1, E) fc_out bias
    o_ref        : (bb, Lp, E) output
    ctx_ref      : (bb*Lp, E) f32 VMEM scratch holding the head-concatenated context
    """
    bb, Lp, E = xq_ref.shape
    BL = bb * Lp
    D = E // heads
    scale = jnp.float32(1.0 / (E ** 0.5))   # module divides by sqrt(embed_size)

    # Tile-aligned reshapes (Lp % 8 == 0, E % 128 == 0) -> no relayout copies.
    xq = xq_ref[...].reshape(BL, E)
    xk = xk_ref[...].reshape(BL, E)
    xv = xv_ref[...].reshape(BL, E)

    # Lane-dense projections: single K=E contraction per tensor (block-diag weights).
    q = jnp.dot(xq, wqbd_ref[...], preferred_element_type=jnp.float32).reshape(bb, Lp, E)
    k = jnp.dot(xk, wkbd_ref[...], preferred_element_type=jnp.float32).reshape(bb, Lp, E)
    v = jnp.dot(xv, wvbd_ref[...], preferred_element_type=jnp.float32).reshape(bb, Lp, E)

    # Static key-padding mask (only traced when the wrapper actually padded L).
    if Lp > l_actual:
        kmask = jax.lax.broadcasted_iota(jnp.int32, (1, 1, Lp), 2) < l_actual

    for h in range(heads):                            # static unroll over heads
        lo = h * D
        qh = q[:, :, lo:lo + D]                       # (bb, Lp, D)
        kh = k[:, :, lo:lo + D]
        vh = v[:, :, lo:lo + D]

        # energy = q @ k^T per head, batched over the batch block
        energy = jnp.einsum('bqd,bkd->bqk', qh, kh,
                            preferred_element_type=jnp.float32) * scale
        if Lp > l_actual:
            energy = jnp.where(kmask, energy, jnp.float32(-1e30))

        # softmax over key axis (exact reciprocal to hold the 1e-4 verification
        # tolerance; pl.reciprocal(..., approx=True) is a free EUP alternative)
        m = jnp.max(energy, axis=-1, keepdims=True)
        p = jnp.exp(energy - m)
        attn = p * pl.reciprocal(jnp.sum(p, axis=-1, keepdims=True), approx=False)

        ctx = jnp.einsum('bqk,bkd->bqd', attn, vh,
                         preferred_element_type=jnp.float32)          # (bb, Lp, D)

        # Head-concat folded into the VMEM context slab (lane-slice store).
        ctx_ref[:, lo:lo + D] = ctx.reshape(BL, D)

    # Single K=E fc_out GEMM on the full lane-dense context + bias, one dense store.
    out = jnp.dot(ctx_ref[...], wot_ref[...],
                  preferred_element_type=jnp.float32) + bo_ref[...]
    o_ref[...] = out.reshape(bb, Lp, E).astype(o_ref.dtype)


def multi_head_attention(values, keys, query, wq, wk, wv, wo, bo, batch_block=None):
    """values/keys/query: (N, L, E) float32. Returns (N, L, E)."""
    N, L, E = query.shape
    H = HEADS
    D = E // H
    assert D * H == E

    # Pad L to a multiple of 8 sublanes so all in-kernel reshapes/stores are
    # tile-aligned; padded key columns are masked inside the kernel.
    Lp = ((L + 7) // 8) * 8
    if Lp != L:
        pad = ((0, 0), (0, Lp - L), (0, 0))
        query = jnp.pad(query, pad)
        keys = jnp.pad(keys, pad)
        values = jnp.pad(values, pad)

    # Several batch elements per grid step (amortizes ~0.35us/step overhead),
    # but keep grid_n >= 2 so both v7x TensorCores get work on the parallel axis.
    if batch_block is None:
        cap = min(N, 16)
        if N >= 2:
            cap = min(cap, max(N // 2, 1))
        batch_block = next(b for b in range(cap, 0, -1) if N % b == 0)
    assert N % batch_block == 0
    grid_n = N // batch_block

    # Pre-transposed, block-diagonal projection weights: y = x @ kron(I, w.T)
    # reproduces the per-head x_h @ w.T of the module with a K=E contraction.
    # (At E=128 this exactly fills the 128-deep MXU; re-profile at E=512.)
    eye_h = jnp.eye(H, dtype=wq.dtype)
    wq_bd_t = jnp.kron(eye_h, wq.T)       # (E, E)
    wk_bd_t = jnp.kron(eye_h, wk.T)
    wv_bd_t = jnp.kron(eye_h, wv.T)
    wo_t = wo.T                           # (E, E), no in-kernel transpose
    bo2d = bo.reshape(1, E)

    x_spec = pl.BlockSpec((batch_block, Lp, E), lambda n: (n, 0, 0))
    w_spec = pl.BlockSpec((E, E), lambda n: (0, 0))   # constant index -> resident
    b_spec = pl.BlockSpec((1, E), lambda n: (0, 0))
    out_spec = pl.BlockSpec((batch_block, Lp, E), lambda n: (n, 0, 0))

    BL = batch_block * Lp
    # Explicit VMEM budget: double-buffered I/O tiles + weights + context scratch
    # + f32 working set, with headroom, capped at 32 MiB (portable to v7x).
    tile_bytes = BL * E * 4
    need = (4 * 2 * tile_bytes            # xq/xk/xv/out tiles, double-buffered
            + 4 * 2 * E * E * 4           # 4 weight matrices
            + tile_bytes                  # ctx VMEM scratch
            + 4 * tile_bytes)             # q/k/v/out f32 working values
    vmem_limit = int(min(max(2 * need, 8 << 20), 32 << 20))

    kernel = functools.partial(_mha_kernel, l_actual=L, heads=H)

    out = pl.pallas_call(
        kernel,
        out_shape=jax.ShapeDtypeStruct((N, Lp, E), jnp.float32),
        grid_spec=pltpu.PrefetchScalarGridSpec(
            num_scalar_prefetch=0,
            grid=(grid_n,),
            in_specs=[x_spec, x_spec, x_spec,
                      w_spec, w_spec, w_spec, w_spec, b_spec],
            out_specs=out_spec,
            scratch_shapes=[pltpu.VMEM((BL, E), jnp.float32)],
        ),
        compiler_params=pltpu.CompilerParams(
            dimension_semantics=("parallel",),
            vmem_limit_bytes=vmem_limit,
        ),
    )(query, keys, values, wq_bd_t, wk_bd_t, wv_bd_t, wo_t, bo2d)

    return out[:, :L, :] if Lp != L else out


def reference_mha(values, keys, query, wq, wk, wv, wo, bo):
    """Pure-JAX mirror of the PyTorch forward, for verification."""
    N, L, E = query.shape
    D = E // HEADS
    v_ = values.reshape(N, L, HEADS, D) @ wv.T
    k_ = keys.reshape(N, L, HEADS, D) @ wk.T
    q_ = query.reshape(N, L, HEADS, D) @ wq.T
    energy = jnp.einsum('nqhd,nkhd->nhqk', q_, k_)
    attn = jax.nn.softmax(energy / (E ** 0.5), axis=3)
    out = jnp.einsum('nhql,nlhd->nqhd', attn, v_).reshape(N, L, E)
    return out @ wo.T + bo


if __name__ == "__main__":
    key = jax.random.PRNGKey(0)
    k_in, k_w = jax.random.split(key)
    kq, kk, kv = jax.random.split(k_in, 3)
    kwq, kwk, kwv, kwo, kbo = jax.random.split(k_w, 5)

    # deterministic synthetic inputs / parameters (no checkpoint load)
    query  = jax.random.uniform(kq, (N_BATCH, SEQ_LEN, EMBED), dtype=jnp.float32)
    keys   = jax.random.uniform(kk, (N_BATCH, SEQ_LEN, EMBED), dtype=jnp.float32)
    values = jax.random.uniform(kv, (N_BATCH, SEQ_LEN, EMBED), dtype=jnp.float32)

    wq = jax.random.normal(kwq, (HEAD_D, HEAD_D), dtype=jnp.float32) * 0.1
    wk = jax.random.normal(kwk, (HEAD_D, HEAD_D), dtype=jnp.float32) * 0.1
    wv = jax.random.normal(kwv, (HEAD_D, HEAD_D), dtype=jnp.float32) * 0.1
    wo = jax.random.normal(kwo, (EMBED, EMBED), dtype=jnp.float32) * 0.05
    bo = jax.random.normal(kbo, (EMBED,), dtype=jnp.float32) * 0.05

    out = multi_head_attention(values, keys, query, wq, wk, wv, wo, bo)
    out = jax.block_until_ready(out)

    ref = reference_mha(values, keys, query, wq, wk, wv, wo, bo)
    np.testing.assert_allclose(np.asarray(out), np.asarray(ref), rtol=1e-4, atol=1e-4)

    print("KERNEL_OK")
</pallas_src>

<mosaic_0001>
module attributes {stable_mosaic.version = 11 : i64} {
  func.func @_mha_kernel(%arg0: i32, %arg1: memref<1x8x128xf32, #tpu.memory_space<vmem>>, %arg2: memref<1x8x128xf32, #tpu.memory_space<vmem>>, %arg3: memref<1x8x128xf32, #tpu.memory_space<vmem>>, %arg4: memref<128x128xf32, #tpu.memory_space<vmem>>, %arg5: memref<128x128xf32, #tpu.memory_space<vmem>>, %arg6: memref<128x128xf32, #tpu.memory_space<vmem>>, %arg7: memref<128x128xf32, #tpu.memory_space<vmem>>, %arg8: memref<1x128xf32, #tpu.memory_space<vmem>>, %arg9: memref<1x8x128xf32, #tpu.memory_space<vmem>>, %arg10: memref<8x128xf32, #tpu.memory_space<vmem>>) attributes {dimension_semantics = [#tpu.dimension_semantics<parallel>], iteration_bounds = array<i64: 2>, scalar_prefetch = 0 : i64, scratch_operands = 1 : i64, tpu.core_type = #tpu.core_type<tc>, window_params = [{transform_indices = @transform_0, window_bounds = array<i64: 1, 8, 128>}, {transform_indices = @transform_1, window_bounds = array<i64: 1, 8, 128>}, {transform_indices = @transform_2, window_bounds = array<i64: 1, 8, 128>}, {pipeline_mode = #tpu.pipeline_mode<synchronous>, transform_indices = @transform_3, window_bounds = array<i64: 128, 128>}, {pipeline_mode = #tpu.pipeline_mode<synchronous>, transform_indices = @transform_4, window_bounds = array<i64: 128, 128>}, {pipeline_mode = #tpu.pipeline_mode<synchronous>, transform_indices = @transform_5, window_bounds = array<i64: 128, 128>}, {pipeline_mode = #tpu.pipeline_mode<synchronous>, transform_indices = @transform_6, window_bounds = array<i64: 128, 128>}, {pipeline_mode = #tpu.pipeline_mode<synchronous>, transform_indices = @transform_7, window_bounds = array<i64: 1, 128>}, {transform_indices = @transform_8, window_bounds = array<i64: 1, 8, 128>}]} {
    %c0 = arith.constant 0 : index
    %c0_0 = arith.constant 0 : index
    %c0_1 = arith.constant 0 : index
    %0 = vector.load %arg1[%c0, %c0_0, %c0_1] : memref<1x8x128xf32, #tpu.memory_space<vmem>>, vector<1x8x128xf32>
    %1 = vector.shape_cast %0 : vector<1x8x128xf32> to vector<8x128xf32>
    %c0_2 = arith.constant 0 : index
    %c0_3 = arith.constant 0 : index
    %c0_4 = arith.constant 0 : index
    %2 = vector.load %arg2[%c0_2, %c0_3, %c0_4] : memref<1x8x128xf32, #tpu.memory_space<vmem>>, vector<1x8x128xf32>
    %3 = vector.shape_cast %2 : vector<1x8x128xf32> to vector<8x128xf32>
    %c0_5 = arith.constant 0 : index
    %c0_6 = arith.constant 0 : index
    %c0_7 = arith.constant 0 : index
    %4 = vector.load %arg3[%c0_5, %c0_6, %c0_7] : memref<1x8x128xf32, #tpu.memory_space<vmem>>, vector<1x8x128xf32>
    %5 = vector.shape_cast %4 : vector<1x8x128xf32> to vector<8x128xf32>
    %c0_8 = arith.constant 0 : index
    %c0_9 = arith.constant 0 : index
    %6 = vector.load %arg4[%c0_8, %c0_9] : memref<128x128xf32, #tpu.memory_space<vmem>>, vector<128x128xf32>
    %cst = arith.constant dense<0.000000e+00> : vector<8x128xf32>
    %7 = tpu.matmul %1, %6, %cst {dimension_numbers = #tpu.dot_dimension_numbers<[1], [0], [0], [1], [0, 0, 1, 1], [], []>} : vector<8x128xf32>, vector<128x128xf32>, vector<8x128xf32> -> vector<8x128xf32>
    %8 = vector.shape_cast %7 : vector<8x128xf32> to vector<1x8x128xf32>
    %c0_10 = arith.constant 0 : index
    %c0_11 = arith.constant 0 : index
    %9 = vector.load %arg5[%c0_10, %c0_11] : memref<128x128xf32, #tpu.memory_space<vmem>>, vector<128x128xf32>
    %cst_12 = arith.constant dense<0.000000e+00> : vector<8x128xf32>
    %10 = tpu.matmul %3, %9, %cst_12 {dimension_numbers = #tpu.dot_dimension_numbers<[1], [0], [0], [1], [0, 0, 1, 1], [], []>} : vector<8x128xf32>, vector<128x128xf32>, vector<8x128xf32> -> vector<8x128xf32>
    %11 = vector.shape_cast %10 : vector<8x128xf32> to vector<1x8x128xf32>
    %c0_13 = arith.constant 0 : index
    %c0_14 = arith.constant 0 : index
    %12 = vector.load %arg6[%c0_13, %c0_14] : memref<128x128xf32, #tpu.memory_space<vmem>>, vector<128x128xf32>
    %cst_15 = arith.constant dense<0.000000e+00> : vector<8x128xf32>
    %13 = tpu.matmul %5, %12, %cst_15 {dimension_numbers = #tpu.dot_dimension_numbers<[1], [0], [0], [1], [0, 0, 1, 1], [], []>} : vector<8x128xf32>, vector<128x128xf32>, vector<8x128xf32> -> vector<8x128xf32>
    %14 = vector.shape_cast %13 : vector<8x128xf32> to vector<1x8x128xf32>
    %15 = vector.extract_strided_slice %8 {offsets = [0, 0, 0], sizes = [1, 8, 16], strides = [1, 1, 1]} : vector<1x8x128xf32> to vector<1x8x16xf32>
    %16 = vector.extract_strided_slice %11 {offsets = [0, 0, 0], sizes = [1, 8, 16], strides = [1, 1, 1]} : vector<1x8x128xf32> to vector<1x8x16xf32>
    %17 = vector.extract_strided_slice %14 {offsets = [0, 0, 0], sizes = [1, 8, 16], strides = [1, 1, 1]} : vector<1x8x128xf32> to vector<1x8x16xf32>
    "tpu.trace_start"() <{level = 10 : i32, message = "bqd,bkd->bqk"}> : () -> ()
    %cst_16 = arith.constant dense<0.000000e+00> : vector<1x8x8xf32>
    %18 = tpu.matmul %15, %16, %cst_16 {dimension_numbers = #tpu.dot_dimension_numbers<[2], [2], [1], [1], [0, 0, 0, 1, 1, 1], [0], [0]>} : vector<1x8x16xf32>, vector<1x8x16xf32>, vector<1x8x8xf32> -> vector<1x8x8xf32>
    "tpu.trace_stop"() : () -> ()
    %cst_17 = arith.constant 0.0883883461 : f32
    %19 = vector.broadcast %cst_17 : f32 to vector<1x8x8xf32>
    %20 = arith.mulf %18, %19 : vector<1x8x8xf32>
    %cst_18 = arith.constant dense<0xFF800000> : vector<1x8xf32>
    %21 = vector.multi_reduction <maximumf>, %20, %cst_18 [2] : vector<1x8x8xf32> to vector<1x8xf32>
    %22 = vector.shape_cast %21 : vector<1x8xf32> to vector<1x8x1xf32>
    %23 = vector.broadcast %22 : vector<1x8x1xf32> to vector<1x8x8xf32>
    %24 = arith.subf %20, %23 : vector<1x8x8xf32>
    %25 = math.exp %24 : vector<1x8x8xf32>
    %cst_19 = arith.constant dense<0.000000e+00> : vector<1x8xf32>
    %26 = vector.multi_reduction <add>, %25, %cst_19 [2] : vector<1x8x8xf32> to vector<1x8xf32>
    %27 = vector.shape_cast %26 : vector<1x8xf32> to vector<1x8x1xf32>
    %28 = tpu.reciprocal %27 : vector<1x8x1xf32> -> vector<1x8x1xf32>
    %29 = vector.broadcast %28 : vector<1x8x1xf32> to vector<1x8x8xf32>
    %30 = arith.mulf %25, %29 : vector<1x8x8xf32>
    "tpu.trace_start"() <{level = 10 : i32, message = "bqk,bkd->bqd"}> : () -> ()
    %cst_20 = arith.constant dense<0.000000e+00> : vector<1x8x16xf32>
    %31 = tpu.matmul %30, %17, %cst_20 {dimension_numbers = #tpu.dot_dimension_numbers<[2], [1], [1], [2], [0, 0, 0, 1, 1, 2], [0], [0]>} : vector<1x8x8xf32>, vector<1x8x16xf32>, vector<1x8x16xf32> -> vector<1x8x16xf32>
    "tpu.trace_stop"() : () -> ()
    %32 = vector.shape_cast %31 : vector<1x8x16xf32> to vector<8x16xf32>
    %c0_21 = arith.constant 0 : index
    %c0_22 = arith.constant 0 : index
    %33 = vector.load %arg10[%c0_21, %c0_22] : memref<8x128xf32, #tpu.memory_space<vmem>>, vector<8x16xf32>
    tpu.vector_store %arg10[%c0_21, %c0_22], %32 {strides = array<i32>} : memref<8x128xf32, #tpu.memory_space<vmem>>, vector<8x16xf32>,
    %34 = vector.extract_strided_slice %8 {offsets = [0, 0, 16], sizes = [1, 8, 16], strides = [1, 1, 1]} : vector<1x8x128xf32> to vector<1x8x16xf32>
    %35 = vector.extract_strided_slice %11 {offsets = [0, 0, 16], sizes = [1, 8, 16], strides = [1, 1, 1]} : vector<1x8x128xf32> to vector<1x8x16xf32>
    %36 = vector.extract_strided_slice %14 {offsets = [0, 0, 16], sizes = [1, 8, 16], strides = [1, 1, 1]} : vector<1x8x128xf32> to vector<1x8x16xf32>
    "tpu.trace_start"() <{level = 10 : i32, message = "bqd,bkd->bqk"}> : () -> ()
    %cst_23 = arith.constant dense<0.000000e+00> : vector<1x8x8xf32>
    %37 = tpu.matmul %34, %35, %cst_23 {dimension_numbers = #tpu.dot_dimension_numbers<[2], [2], [1], [1], [0, 0, 0, 1, 1, 1], [0], [0]>} : vector<1x8x16xf32>, vector<1x8x16xf32>, vector<1x8x8xf32> -> vector<1x8x8xf32>
    "tpu.trace_stop"() : () -> ()
    %cst_24 = arith.constant 0.0883883461 : f32
    %38 = vector.broadcast %cst_24 : f32 to vector<1x8x8xf32>
    %39 = arith.mulf %37, %38 : vector<1x8x8xf32>
    %cst_25 = arith.constant dense<0xFF800000> : vector<1x8xf32>
    %40 = vector.multi_reduction <maximumf>, %39, %cst_25 [2] : vector<1x8x8xf32> to vector<1x8xf32>
    %41 = vector.shape_cast %40 : vector<1x8xf32> to vector<1x8x1xf32>
    %42 = vector.broadcast %41 : vector<1x8x1xf32> to vector<1x8x8xf32>
    %43 = arith.subf %39, %42 : vector<1x8x8xf32>
    %44 = math.exp %43 : vector<1x8x8xf32>
    %cst_26 = arith.constant dense<0.000000e+00> : vector<1x8xf32>
    %45 = vector.multi_reduction <add>, %44, %cst_26 [2] : vector<1x8x8xf32> to vector<1x8xf32>
    %46 = vector.shape_cast %45 : vector<1x8xf32> to vector<1x8x1xf32>
    %47 = tpu.reciprocal %46 : vector<1x8x1xf32> -> vector<1x8x1xf32>
    %48 = vector.broadcast %47 : vector<1x8x1xf32> to vector<1x8x8xf32>
    %49 = arith.mulf %44, %48 : vector<1x8x8xf32>
    "tpu.trace_start"() <{level = 10 : i32, message = "bqk,bkd->bqd"}> : () -> ()
    %cst_27 = arith.constant dense<0.000000e+00> : vector<1x8x16xf32>
    %50 = tpu.matmul %49, %36, %cst_27 {dimension_numbers = #tpu.dot_dimension_numbers<[2], [1], [1], [2], [0, 0, 0, 1, 1, 2], [0], [0]>} : vector<1x8x8xf32>, vector<1x8x16xf32>, vector<1x8x16xf32> -> vector<1x8x16xf32>
    "tpu.trace_stop"() : () -> ()
    %51 = vector.shape_cast %50 : vector<1x8x16xf32> to vector<8x16xf32>
    %c0_28 = arith.constant 0 : index
    %c16 = arith.constant 16 : index
    %52 = vector.load %arg10[%c0_28, %c16] : memref<8x128xf32, #tpu.memory_space<vmem>>, vector<8x16xf32>
    tpu.vector_store %arg10[%c0_28, %c16], %51 {strides = array<i32>} : memref<8x128xf32, #tpu.memory_space<vmem>>, vector<8x16xf32>,
    %53 = vector.extract_strided_slice %8 {offsets = [0, 0, 32], sizes = [1, 8, 16], strides = [1, 1, 1]} : vector<1x8x128xf32> to vector<1x8x16xf32>
    %54 = vector.extract_strided_slice %11 {offsets = [0, 0, 32], sizes = [1, 8, 16], strides = [1, 1, 1]} : vector<1x8x128xf32> to vector<1x8x16xf32>
    %55 = vector.extract_strided_slice %14 {offsets = [0, 0, 32], sizes = [1, 8, 16], strides = [1, 1, 1]} : vector<1x8x128xf32> to vector<1x8x16xf32>
    "tpu.trace_start"() <{level = 10 : i32, message = "bqd,bkd->bqk"}> : () -> ()
    %cst_29 = arith.constant dense<0.000000e+00> : vector<1x8x8xf32>
    %56 = tpu.matmul %53, %54, %cst_29 {dimension_numbers = #tpu.dot_dimension_numbers<[2], [2], [1], [1], [0, 0, 0, 1, 1, 1], [0], [0]>} : vector<1x8x16xf32>, vector<1x8x16xf32>, vector<1x8x8xf32> -> vector<1x8x8xf32>
    "tpu.trace_stop"() : () -> ()
    %cst_30 = arith.constant 0.0883883461 : f32
    %57 = vector.broadcast %cst_30 : f32 to vector<1x8x8xf32>
    %58 = arith.mulf %56, %57 : vector<1x8x8xf32>
    %cst_31 = arith.constant dense<0xFF800000> : vector<1x8xf32>
    %59 = vector.multi_reduction <maximumf>, %58, %cst_31 [2] : vector<1x8x8xf32> to vector<1x8xf32>
    %60 = vector.shape_cast %59 : vector<1x8xf32> to vector<1x8x1xf32>
    %61 = vector.broadcast %60 : vector<1x8x1xf32> to vector<1x8x8xf32>
    %62 = arith.subf %58, %61 : vector<1x8x8xf32>
    %63 = math.exp %62 : vector<1x8x8xf32>
    %cst_32 = arith.constant dense<0.000000e+00> : vector<1x8xf32>
    %64 = vector.multi_reduction <add>, %63, %cst_32 [2] : vector<1x8x8xf32> to vector<1x8xf32>
    %65 = vector.shape_cast %64 : vector<1x8xf32> to vector<1x8x1xf32>
    %66 = tpu.reciprocal %65 : vector<1x8x1xf32> -> vector<1x8x1xf32>
    %67 = vector.broadcast %66 : vector<1x8x1xf32> to vector<1x8x8xf32>
    %68 = arith.mulf %63, %67 : vector<1x8x8xf32>
    "tpu.trace_start"() <{level = 10 : i32, message = "bqk,bkd->bqd"}> : () -> ()
    %cst_33 = arith.constant dense<0.000000e+00> : vector<1x8x16xf32>
    %69 = tpu.matmul %68, %55, %cst_33 {dimension_numbers = #tpu.dot_dimension_numbers<[2], [1], [1], [2], [0, 0, 0, 1, 1, 2], [0], [0]>} : vector<1x8x8xf32>, vector<1x8x16xf32>, vector<1x8x16xf32> -> vector<1x8x16xf32>
    "tpu.trace_stop"() : () -> ()
    %70 = vector.shape_cast %69 : vector<1x8x16xf32> to vector<8x16xf32>
    %c0_34 = arith.constant 0 : index
    %c32 = arith.constant 32 : index
    %71 = vector.load %arg10[%c0_34, %c32] : memref<8x128xf32, #tpu.memory_space<vmem>>, vector<8x16xf32>
    tpu.vector_store %arg10[%c0_34, %c32], %70 {strides = array<i32>} : memref<8x128xf32, #tpu.memory_space<vmem>>, vector<8x16xf32>,
    %72 = vector.extract_strided_slice %8 {offsets = [0, 0, 48], sizes = [1, 8, 16], strides = [1, 1, 1]} : vector<1x8x128xf32> to vector<1x8x16xf32>
    %73 = vector.extract_strided_slice %11 {offsets = [0, 0, 48], sizes = [1, 8, 16], strides = [1, 1, 1]} : vector<1x8x128xf32> to vector<1x8x16xf32>
    %74 = vector.extract_strided_slice %14 {offsets = [0, 0, 48], sizes = [1, 8, 16], strides = [1, 1, 1]} : vector<1x8x128xf32> to vector<1x8x16xf32>
    "tpu.trace_start"() <{level = 10 : i32, message = "bqd,bkd->bqk"}> : () -> ()
    %cst_35 = arith.constant dense<0.000000e+00> : vector<1x8x8xf32>
    %75 = tpu.matmul %72, %73, %cst_35 {dimension_numbers = #tpu.dot_dimension_numbers<[2], [2], [1], [1], [0, 0, 0, 1, 1, 1], [0], [0]>} : vector<1x8x16xf32>, vector<1x8x16xf32>, vector<1x8x8xf32> -> vector<1x8x8xf32>
    "tpu.trace_stop"() : () -> ()
    %cst_36 = arith.constant 0.0883883461 : f32
    %76 = vector.broadcast %cst_36 : f32 to vector<1x8x8xf32>
    %77 = arith.mulf %75, %76 : vector<1x8x8xf32>
    %cst_37 = arith.constant dense<0xFF800000> : vector<1x8xf32>
    %78 = vector.multi_reduction <maximumf>, %77, %cst_37 [2] : vector<1x8x8xf32> to vector<1x8xf32>
    %79 = vector.shape_cast %78 : vector<1x8xf32> to vector<1x8x1xf32>
    %80 = vector.broadcast %79 : vector<1x8x1xf32> to vector<1x8x8xf32>
    %81 = arith.subf %77, %80 : vector<1x8x8xf32>
    %82 = math.exp %81 : vector<1x8x8xf32>
    %cst_38 = arith.constant dense<0.000000e+00> : vector<1x8xf32>
    %83 = vector.multi_reduction <add>, %82, %cst_38 [2] : vector<1x8x8xf32> to vector<1x8xf32>
    %84 = vector.shape_cast %83 : vector<1x8xf32> to vector<1x8x1xf32>
    %85 = tpu.reciprocal %84 : vector<1x8x1xf32> -> vector<1x8x1xf32>
    %86 = vector.broadcast %85 : vector<1x8x1xf32> to vector<1x8x8xf32>
    %87 = arith.mulf %82, %86 : vector<1x8x8xf32>
    "tpu.trace_start"() <{level = 10 : i32, message = "bqk,bkd->bqd"}> : () -> ()
    %cst_39 = arith.constant dense<0.000000e+00> : vector<1x8x16xf32>
    %88 = tpu.matmul %87, %74, %cst_39 {dimension_numbers = #tpu.dot_dimension_numbers<[2], [1], [1], [2], [0, 0, 0, 1, 1, 2], [0], [0]>} : vector<1x8x8xf32>, vector<1x8x16xf32>, vector<1x8x16xf32> -> vector<1x8x16xf32>
    "tpu.trace_stop"() : () -> ()
    %89 = vector.shape_cast %88 : vector<1x8x16xf32> to vector<8x16xf32>
    %c0_40 = arith.constant 0 : index
    %c48 = arith.constant 48 : index
    %90 = vector.load %arg10[%c0_40, %c48] : memref<8x128xf32, #tpu.memory_space<vmem>>, vector<8x16xf32>
    tpu.vector_store %arg10[%c0_40, %c48], %89 {strides = array<i32>} : memref<8x128xf32, #tpu.memory_space<vmem>>, vector<8x16xf32>,
    %91 = vector.extract_strided_slice %8 {offsets = [0, 0, 64], sizes = [1, 8, 16], strides = [1, 1, 1]} : vector<1x8x128xf32> to vector<1x8x16xf32>
    %92 = vector.extract_strided_slice %11 {offsets = [0, 0, 64], sizes = [1, 8, 16], strides = [1, 1, 1]} : vector<1x8x128xf32> to vector<1x8x16xf32>
    %93 = vector.extract_strided_slice %14 {offsets = [0, 0, 64], sizes = [1, 8, 16], strides = [1, 1, 1]} : vector<1x8x128xf32> to vector<1x8x16xf32>
    "tpu.trace_start"() <{level = 10 : i32, message = "bqd,bkd->bqk"}> : () -> ()
    %cst_41 = arith.constant dense<0.000000e+00> : vector<1x8x8xf32>
    %94 = tpu.matmul %91, %92, %cst_41 {dimension_numbers = #tpu.dot_dimension_numbers<[2], [2], [1], [1], [0, 0, 0, 1, 1, 1], [0], [0]>} : vector<1x8x16xf32>, vector<1x8x16xf32>, vector<1x8x8xf32> -> vector<1x8x8xf32>
    "tpu.trace_stop"() : () -> ()
    %cst_42 = arith.constant 0.0883883461 : f32
    %95 = vector.broadcast %cst_42 : f32 to vector<1x8x8xf32>
    %96 = arith.mulf %94, %95 : vector<1x8x8xf32>
    %cst_43 = arith.constant dense<0xFF800000> : vector<1x8xf32>
    %97 = vector.multi_reduction <maximumf>, %96, %cst_43 [2] : vector<1x8x8xf32> to vector<1x8xf32>
    %98 = vector.shape_cast %97 : vector<1x8xf32> to vector<1x8x1xf32>
    %99 = vector.broadcast %98 : vector<1x8x1xf32> to vector<1x8x8xf32>
    %100 = arith.subf %96, %99 : vector<1x8x8xf32>
    %101 = math.exp %100 : vector<1x8x8xf32>
    %cst_44 = arith.constant dense<0.000000e+00> : vector<1x8xf32>
    %102 = vector.multi_reduction <add>, %101, %cst_44 [2] : vector<1x8x8xf32> to vector<1x8xf32>
    %103 = vector.shape_cast %102 : vector<1x8xf32> to vector<1x8x1xf32>
    %104 = tpu.reciprocal %103 : vector<1x8x1xf32> -> vector<1x8x1xf32>
    %105 = vector.broadcast %104 : vector<1x8x1xf32> to vector<1x8x8xf32>
    %106 = arith.mulf %101, %105 : vector<1x8x8xf32>
    "tpu.trace_start"() <{level = 10 : i32, message = "bqk,bkd->bqd"}> : () -> ()
    %cst_45 = arith.constant dense<0.000000e+00> : vector<1x8x16xf32>
    %107 = tpu.matmul %106, %93, %cst_45 {dimension_numbers = #tpu.dot_dimension_numbers<[2], [1], [1], [2], [0, 0, 0, 1, 1, 2], [0], [0]>} : vector<1x8x8xf32>, vector<1x8x16xf32>, vector<1x8x16xf32> -> vector<1x8x16xf32>
    "tpu.trace_stop"() : () -> ()
    %108 = vector.shape_cast %107 : vector<1x8x16xf32> to vector<8x16xf32>
    %c0_46 = arith.constant 0 : index
    %c64 = arith.constant 64 : index
    %109 = vector.load %arg10[%c0_46, %c64] : memref<8x128xf32, #tpu.memory_space<vmem>>, vector<8x16xf32>
    tpu.vector_store %arg10[%c0_46, %c64], %108 {strides = array<i32>} : memref<8x128xf32, #tpu.memory_space<vmem>>, vector<8x16xf32>,
    %110 = vector.extract_strided_slice %8 {offsets = [0, 0, 80], sizes = [1, 8, 16], strides = [1, 1, 1]} : vector<1x8x128xf32> to vector<1x8x16xf32>
    %111 = vector.extract_strided_slice %11 {offsets = [0, 0, 80], sizes = [1, 8, 16], strides = [1, 1, 1]} : vector<1x8x128xf32> to vector<1x8x16xf32>
    %112 = vector.extract_strided_slice %14 {offsets = [0, 0, 80], sizes = [1, 8, 16], strides = [1, 1, 1]} : vector<1x8x128xf32> to vector<1x8x16xf32>
    "tpu.trace_start"() <{level = 10 : i32, message = "bqd,bkd->bqk"}> : () -> ()
    %cst_47 = arith.constant dense<0.000000e+00> : vector<1x8x8xf32>
    %113 = tpu.matmul %110, %111, %cst_47 {dimension_numbers = #tpu.dot_dimension_numbers<[2], [2], [1], [1], [0, 0, 0, 1, 1, 1], [0], [0]>} : vector<1x8x16xf32>, vector<1x8x16xf32>, vector<1x8x8xf32> -> vector<1x8x8xf32>
    "tpu.trace_stop"() : () -> ()
    %cst_48 = arith.constant 0.0883883461 : f32
    %114 = vector.broadcast %cst_48 : f32 to vector<1x8x8xf32>
    %115 = arith.mulf %113, %114 : vector<1x8x8xf32>
    %cst_49 = arith.constant dense<0xFF800000> : vector<1x8xf32>
    %116 = vector.multi_reduction <maximumf>, %115, %cst_49 [2] : vector<1x8x8xf32> to vector<1x8xf32>
    %117 = vector.shape_cast %116 : vector<1x8xf32> to vector<1x8x1xf32>
    %118 = vector.broadcast %117 : vector<1x8x1xf32> to vector<1x8x8xf32>
    %119 = arith.subf %115, %118 : vector<1x8x8xf32>
    %120 = math.exp %119 : vector<1x8x8xf32>
    %cst_50 = arith.constant dense<0.000000e+00> : vector<1x8xf32>
    %121 = vector.multi_reduction <add>, %120, %cst_50 [2] : vector<1x8x8xf32> to vector<1x8xf32>
    %122 = vector.shape_cast %121 : vector<1x8xf32> to vector<1x8x1xf32>
    %123 = tpu.reciprocal %122 : vector<1x8x1xf32> -> vector<1x8x1xf32>
    %124 = vector.broadcast %123 : vector<1x8x1xf32> to vector<1x8x8xf32>
    %125 = arith.mulf %120, %124 : vector<1x8x8xf32>
    "tpu.trace_start"() <{level = 10 : i32, message = "bqk,bkd->bqd"}> : () -> ()
    %cst_51 = arith.constant dense<0.000000e+00> : vector<1x8x16xf32>
    %126 = tpu.matmul %125, %112, %cst_51 {dimension_numbers = #tpu.dot_dimension_numbers<[2], [1], [1], [2], [0, 0, 0, 1, 1, 2], [0], [0]>} : vector<1x8x8xf32>, vector<1x8x16xf32>, vector<1x8x16xf32> -> vector<1x8x16xf32>
    "tpu.trace_stop"() : () -> ()
    %127 = vector.shape_cast %126 : vector<1x8x16xf32> to vector<8x16xf32>
    %c0_52 = arith.constant 0 : index
    %c80 = arith.constant 80 : index
    %128 = vector.load %arg10[%c0_52, %c80] : memref<8x128xf32, #tpu.memory_space<vmem>>, vector<8x16xf32>
    tpu.vector_store %arg10[%c0_52, %c80], %127 {strides = array<i32>} : memref<8x128xf32, #tpu.memory_space<vmem>>, vector<8x16xf32>,
    %129 = vector.extract_strided_slice %8 {offsets = [0, 0, 96], sizes = [1, 8, 16], strides = [1, 1, 1]} : vector<1x8x128xf32> to vector<1x8x16xf32>
    %130 = vector.extract_strided_slice %11 {offsets = [0, 0, 96], sizes = [1, 8, 16], strides = [1, 1, 1]} : vector<1x8x128xf32> to vector<1x8x16xf32>
    %131 = vector.extract_strided_slice %14 {offsets = [0, 0, 96], sizes = [1, 8, 16], strides = [1, 1, 1]} : vector<1x8x128xf32> to vector<1x8x16xf32>
    "tpu.trace_start"() <{level = 10 : i32, message = "bqd,bkd->bqk"}> : () -> ()
    %cst_53 = arith.constant dense<0.000000e+00> : vector<1x8x8xf32>
    %132 = tpu.matmul %129, %130, %cst_53 {dimension_numbers = #tpu.dot_dimension_numbers<[2], [2], [1], [1], [0, 0, 0, 1, 1, 1], [0], [0]>} : vector<1x8x16xf32>, vector<1x8x16xf32>, vector<1x8x8xf32> -> vector<1x8x8xf32>
    "tpu.trace_stop"() : () -> ()
    %cst_54 = arith.constant 0.0883883461 : f32
    %133 = vector.broadcast %cst_54 : f32 to vector<1x8x8xf32>
    %134 = arith.mulf %132, %133 : vector<1x8x8xf32>
    %cst_55 = arith.constant dense<0xFF800000> : vector<1x8xf32>
    %135 = vector.multi_reduction <maximumf>, %134, %cst_55 [2] : vector<1x8x8xf32> to vector<1x8xf32>
    %136 = vector.shape_cast %135 : vector<1x8xf32> to vector<1x8x1xf32>
    %137 = vector.broadcast %136 : vector<1x8x1xf32> to vector<1x8x8xf32>
    %138 = arith.subf %134, %137 : vector<1x8x8xf32>
    %139 = math.exp %138 : vector<1x8x8xf32>
    %cst_56 = arith.constant dense<0.000000e+00> : vector<1x8xf32>
    %140 = vector.multi_reduction <add>, %139, %cst_56 [2] : vector<1x8x8xf32> to vector<1x8xf32>
    %141 = vector.shape_cast %140 : vector<1x8xf32> to vector<1x8x1xf32>
    %142 = tpu.reciprocal %141 : vector<1x8x1xf32> -> vector<1x8x1xf32>
    %143 = vector.broadcast %142 : vector<1x8x1xf32> to vector<1x8x8xf32>
    %144 = arith.mulf %139, %143 : vector<1x8x8xf32>
    "tpu.trace_start"() <{level = 10 : i32, message = "bqk,bkd->bqd"}> : () -> ()
    %cst_57 = arith.constant dense<0.000000e+00> : vector<1x8x16xf32>
    %145 = tpu.matmul %144, %131, %cst_57 {dimension_numbers = #tpu.dot_dimension_numbers<[2], [1], [1], [2], [0, 0, 0, 1, 1, 2], [0], [0]>} : vector<1x8x8xf32>, vector<1x8x16xf32>, vector<1x8x16xf32> -> vector<1x8x16xf32>
    "tpu.trace_stop"() : () -> ()
    %146 = vector.shape_cast %145 : vector<1x8x16xf32> to vector<8x16xf32>
    %c0_58 = arith.constant 0 : index
    %c96 = arith.constant 96 : index
    %147 = vector.load %arg10[%c0_58, %c96] : memref<8x128xf32, #tpu.memory_space<vmem>>, vector<8x16xf32>
    tpu.vector_store %arg10[%c0_58, %c96], %146 {strides = array<i32>} : memref<8x128xf32, #tpu.memory_space<vmem>>, vector<8x16xf32>,
    %148 = vector.extract_strided_slice %8 {offsets = [0, 0, 112], sizes = [1, 8, 16], strides = [1, 1, 1]} : vector<1x8x128xf32> to vector<1x8x16xf32>
    %149 = vector.extract_strided_slice %11 {offsets = [0, 0, 112], sizes = [1, 8, 16], strides = [1, 1, 1]} : vector<1x8x128xf32> to vector<1x8x16xf32>
    %150 = vector.extract_strided_slice %14 {offsets = [0, 0, 112], sizes = [1, 8, 16], strides = [1, 1, 1]} : vector<1x8x128xf32> to vector<1x8x16xf32>
    "tpu.trace_start"() <{level = 10 : i32, message = "bqd,bkd->bqk"}> : () -> ()
    %cst_59 = arith.constant dense<0.000000e+00> : vector<1x8x8xf32>
    %151 = tpu.matmul %148, %149, %cst_59 {dimension_numbers = #tpu.dot_dimension_numbers<[2], [2], [1], [1], [0, 0, 0, 1, 1, 1], [0], [0]>} : vector<1x8x16xf32>, vector<1x8x16xf32>, vector<1x8x8xf32> -> vector<1x8x8xf32>
    "tpu.trace_stop"() : () -> ()
    %cst_60 = arith.constant 0.0883883461 : f32
    %152 = vector.broadcast %cst_60 : f32 to vector<1x8x8xf32>
    %153 = arith.mulf %151, %152 : vector<1x8x8xf32>
    %cst_61 = arith.constant dense<0xFF800000> : vector<1x8xf32>
    %154 = vector.multi_reduction <maximumf>, %153, %cst_61 [2] : vector<1x8x8xf32> to vector<1x8xf32>
    %155 = vector.shape_cast %154 : vector<1x8xf32> to vector<1x8x1xf32>
    %156 = vector.broadcast %155 : vector<1x8x1xf32> to vector<1x8x8xf32>
    %157 = arith.subf %153, %156 : vector<1x8x8xf32>
    %158 = math.exp %157 : vector<1x8x8xf32>
    %cst_62 = arith.constant dense<0.000000e+00> : vector<1x8xf32>
    %159 = vector.multi_reduction <add>, %158, %cst_62 [2] : vector<1x8x8xf32> to vector<1x8xf32>
    %160 = vector.shape_cast %159 : vector<1x8xf32> to vector<1x8x1xf32>
    %161 = tpu.reciprocal %160 : vector<1x8x1xf32> -> vector<1x8x1xf32>
    %162 = vector.broadcast %161 : vector<1x8x1xf32> to vector<1x8x8xf32>
    %163 = arith.mulf %158, %162 : vector<1x8x8xf32>
    "tpu.trace_start"() <{level = 10 : i32, message = "bqk,bkd->bqd"}> : () -> ()
    %cst_63 = arith.constant dense<0.000000e+00> : vector<1x8x16xf32>
    %164 = tpu.matmul %163, %150, %cst_63 {dimension_numbers = #tpu.dot_dimension_numbers<[2], [1], [1], [2], [0, 0, 0, 1, 1, 2], [0], [0]>} : vector<1x8x8xf32>, vector<1x8x16xf32>, vector<1x8x16xf32> -> vector<1x8x16xf32>
    "tpu.trace_stop"() : () -> ()
    %165 = vector.shape_cast %164 : vector<1x8x16xf32> to vector<8x16xf32>
    %c0_64 = arith.constant 0 : index
    %c112 = arith.constant 112 : index
    %166 = vector.load %arg10[%c0_64, %c112] : memref<8x128xf32, #tpu.memory_space<vmem>>, vector<8x16xf32>
    tpu.vector_store %arg10[%c0_64, %c112], %165 {strides = array<i32>} : memref<8x128xf32, #tpu.memory_space<vmem>>, vector<8x16xf32>,
    %c0_65 = arith.constant 0 : index
    %c0_66 = arith.constant 0 : index
    %167 = vector.load %arg10[%c0_65, %c0_66] : memref<8x128xf32, #tpu.memory_space<vmem>>, vector<8x128xf32>
    %c0_67 = arith.constant 0 : index
    %c0_68 = arith.constant 0 : index
    %168 = vector.load %arg7[%c0_67, %c0_68] : memref<128x128xf32, #tpu.memory_space<vmem>>, vector<128x128xf32>
    %cst_69 = arith.constant dense<0.000000e+00> : vector<8x128xf32>
    %169 = tpu.matmul %167, %168, %cst_69 {dimension_numbers = #tpu.dot_dimension_numbers<[1], [0], [0], [1], [0, 0, 1, 1], [], []>} : vector<8x128xf32>, vector<128x128xf32>, vector<8x128xf32> -> vector<8x128xf32>
    %c0_70 = arith.constant 0 : index
    %c0_71 = arith.constant 0 : index
    %170 = vector.load %arg8[%c0_70, %c0_71] : memref<1x128xf32, #tpu.memory_space<vmem>>, vector<1x128xf32>
    %171 = vector.broadcast %170 : vector<1x128xf32> to vector<8x128xf32>
    %172 = arith.addf %169, %171 : vector<8x128xf32>
    %173 = vector.shape_cast %172 : vector<8x128xf32> to vector<1x8x128xf32>
    %c0_72 = arith.constant 0 : index
    %c0_73 = arith.constant 0 : index
    %c0_74 = arith.constant 0 : index
    %174 = vector.load %arg9[%c0_72, %c0_73, %c0_74] : memref<1x8x128xf32, #tpu.memory_space<vmem>>, vector<1x8x128xf32>
    tpu.vector_store %arg9[%c0_72, %c0_73, %c0_74], %173 {strides = array<i32>} : memref<1x8x128xf32, #tpu.memory_space<vmem>>, vector<1x8x128xf32>,
    return
  }
  func.func @transform_0(%arg0: i32) -> (i32, i32, i32) {
    %c0_i32 = arith.constant 0 : i32
    %c0_i32_0 = arith.constant 0 : i32
    %c0_i32_1 = arith.constant 0 : i32
    return %arg0, %c0_i32, %c0_i32_0 : i32, i32, i32
  }
  func.func @transform_1(%arg0: i32) -> (i32, i32, i32) {
    %c0_i32 = arith.constant 0 : i32
    %c0_i32_0 = arith.constant 0 : i32
    %c0_i32_1 = arith.constant 0 : i32
    return %arg0, %c0_i32, %c0_i32_0 : i32, i32, i32
  }
  func.func @transform_2(%arg0: i32) -> (i32, i32, i32) {
    %c0_i32 = arith.constant 0 : i32
    %c0_i32_0 = arith.constant 0 : i32
    %c0_i32_1 = arith.constant 0 : i32
    return %arg0, %c0_i32, %c0_i32_0 : i32, i32, i32
  }
  func.func @transform_3(%arg0: i32) -> (i32, i32) {
    %c0_i32 = arith.constant 0 : i32
    %c0_i32_0 = arith.constant 0 : i32
    %c0_i32_1 = arith.constant 0 : i32
    return %c0_i32, %c0_i32_0 : i32, i32
  }
  func.func @transform_4(%arg0: i32) -> (i32, i32) {
    %c0_i32 = arith.constant 0 : i32
    %c0_i32_0 = arith.constant 0 : i32
    %c0_i32_1 = arith.constant 0 : i32
    return %c0_i32, %c0_i32_0 : i32, i32
  }
  func.func @transform_5(%arg0: i32) -> (i32, i32) {
    %c0_i32 = arith.constant 0 : i32
    %c0_i32_0 = arith.constant 0 : i32
    %c0_i32_1 = arith.constant 0 : i32
    return %c0_i32, %c0_i32_0 : i32, i32
  }
  func.func @transform_6(%arg0: i32) -> (i32, i32) {
    %c0_i32 = arith.constant 0 : i32
    %c0_i32_0 = arith.constant 0 : i32
    %c0_i32_1 = arith.constant 0 : i32
    return %c0_i32, %c0_i32_0 : i32, i32
  }
  func.func @transform_7(%arg0: i32) -> (i32, i32) {
    %c0_i32 = arith.constant 0 : i32
    %c0_i32_0 = arith.constant 0 : i32
    %c0_i32_1 = arith.constant 0 : i32
    return %c0_i32, %c0_i32_0 : i32, i32
  }
  func.func @transform_8(%arg0: i32) -> (i32, i32, i32) {
    %c0_i32 = arith.constant 0 : i32
    %c0_i32_0 = arith.constant 0 : i32
    %c0_i32_1 = arith.constant 0 : i32
    return %arg0, %c0_i32, %c0_i32_0 : i32, i32, i32
  }
}

</mosaic_0001>

<bundles_post_ra>
// kernel: tpu_custom_call.1
= control target key start
LH: loop header
LB: loop body
LE: loop exit
PB: predicated region body
PF: predicated region fallthrough
CT: control target
= control target key end

     0   :  { %s2381_s0 = inlined_call_operand.hbm [shape: f32[2,8,128], index: 0, kind: input, shape index: {}]   ;;  %s2382_s1 = inlined_call_operand.hbm [shape: f32[2,8,128], index: 1, kind: input, shape index: {}]   ;;  %s2383_s2 = inlined_call_operand.hbm [shape: f32[2,8,128], index: 2, kind: input, shape index: {}]   ;;  %s2384_s3 = inlined_call_operand.hbm [shape: f32[128,128], index: 3, kind: input, shape index: {}]   ;;  %s2385_s4 = inlined_call_operand.hbm [shape: f32[128,128], index: 4, kind: input, shape index: {}]   ;;  %s2386_s5 = inlined_call_operand.hbm [shape: f32[128,128], index: 5, kind: input, shape index: {}]   ;;  %s2387_s6 = inlined_call_operand.hbm [shape: f32[128,128], index: 6, kind: input, shape index: {}]   ;;  %s2388_s7 = inlined_call_operand.vmem [shape: f32[1,128], index: 7, kind: input, shape index: {}]   ;;  %s2389_s8 = inlined_call_operand.hbm [shape: f32[2,8,128], index: 8, kind: output, shape index: {}]  }
   0x1   :  { %2399 = sst [smem:[#allocation24_spill]] %s2382_s1 }
   0x2   :  { %2400 = sst [smem:[#allocation25_spill]] %s2384_s3 }
   0x3   :  { %2401 = sst [smem:[#allocation26_spill]] %s2385_s4 }
   0x4   :  { %2402 = sst [smem:[#allocation27_spill]] %s2386_s5 }
   0x5   :  { %2403 = sst [smem:[#allocation28_spill]] %s2387_s6 }
   0x6   :  { %13 = vsyncpa [#allocation4], 0 }
   0x7   :  { %15 = vsyncpa [#allocation4 + $0x1], 0 }
   0x8   :  { %16 = vsyncpa [#allocation7], 0 }
   0x9   :  { %18 = vsyncpa [#allocation7 + $0x1], 0 }
   0xa   :  { %19 = vsyncpa [#allocation10], 0 }
   0xb   :  { %20 = vsyncpa [#allocation13], 0 }
   0xc   :  { %21 = vsyncpa [#allocation5], 0 }
   0xd   :  { %23 = vsyncpa [#allocation5 + $0x1], 0  ;;  %s1994_s27 = smov 0   ;;  %s1996_s28 = smov 0  }
   0xe   :  { %s1998_s29 = smov 0   ;;  %s2000_s30 = smov 0  }
   0xf LB: > { %2404 = sst [smem:[#allocation21_spill]] %s1934_s30  ;;  %s2018_s12 = sadd.s32 4294967295, %s1934_s30   ;;  %s1934_s30 = sphi %s2000_s30, %s2429_s30   ;;  %s1930_s29 = sphi %s1998_s29, %s2433_s29   ;;  %s1926_s28 = sphi %s1996_s28, %s2432_s28   ;;  %s1922_s27 = sphi %s1994_s27, %s2431_s27  }
  0x10   : > { %s2405_s3 = sld [smem:[#allocation25_spill]]  ;;  %p1458_p0 = scmp.ge.s32.totalorder %s1934_s30, 1 }
  0x11   : > { %p2397_p1 = scmp.eq.s32.totalorder %s2018_s12, 0  ;;  %p243_p2 = scmp.lt.s32.totalorder %s1934_s30, 3 }
  0x12   : > { %s1936_s14 = smov [#allocation9]   ;;  %s2407_s5 = sld [smem:[#allocation27_spill]] }
  0x13   : > { %p2023_p3 = pnand %p1458_p0, %p243_p2  ;;  %s256_s15 = sshll.u32 %s1936_s14, 4  ;;  %s257_s15 = int_to_ptr.vmem [resolvable:$true] %s256_s15 }
  0x14   : > { %s1937_s20 = smov [#allocation12]   ;;  %s2390_s22 = smov 128  }
  0x15   : > { %p1531_p4 = pneg %p2023_p3  ;;  %s284_s21 = sshll.u32 %s1937_s20, 4  ;;  %s285_s21 = int_to_ptr.vmem [resolvable:$true] %s284_s21 }
  0x16   : > { %s254_s11 = sshll.u32 %s2405_s3, 4  ;;  %s2392_s23 = smov 8   ;;  %s255_s11 = int_to_ptr.hbm [resolvable:$true] %s254_s11 }
  0x17   : > { %p2035_p6 = pnand %p1531_p4, %p2397_p1  ;;  %s1457_s24 = sadd.s32 4294967294, %s1934_s30  }
  0x18   : > { %s282_s18 = sshll.u32 %s2407_s5, 4  ;;  %s2051_s25 = sadd.s32 1, %s1934_s30   ;;  %s283_s18 = int_to_ptr.hbm [resolvable:$true] %s282_s18 }
  0x19   : > { %1534 = dma.hbm_to_vmem [thread:$0]  (!%p2035_p6), %s255_s11, 2048, %s257_s15, [#allocation10], %s2390_s22, %s2390_s22, %s2392_s23  }
  0x1a   : > { %1540 = dma.hbm_to_vmem [thread:$0]  (!%p2035_p6), %s283_s18, 2048, %s285_s21, [#allocation13], %s2390_s22, %s2390_s22, %s2392_s23  }
  0x1b   : > { %2409 = sst [smem:[#allocation22_spill]] %s2051_s25  ;;  %s33_s26 = ssub.s32 %s1934_s30, %s2051_s25 }
  0x1c   : > { %s36_s9 = sadd.s32 1, %s1930_s29  ;;  %p34_p7 = scmp.eq.s32.totalorder %s33_s26, 0 }
  0x1d   : > { %p43_p8 = scmp.ne.s32.totalorder %s1930_s29, %s1926_s28  ;;  %p44_p9 = scmp.eq.s32.totalorder %s1934_s30, 0 }
  0x1e   : > { %p49_p10 = scmp.ne.s32.totalorder %s1926_s28, %s1922_s27  ;;  %p230_p13 = scmp.eq.s32.totalorder %s2018_s12, 1 }
  0x1f   : > { %s2062_s10 = scalar_select %p34_p7, %s1930_s29, %s36_s9  }
  0x20   : > { %p45_p11 = por %p44_p9, %p43_p8  ;;  %p2066_p12 = por %p2397_p1, %p49_p10 }
  0x21   : > { %2410 = sst [smem:[#allocation23_spill]] %s2062_s10  ;;  %p236_p0 = scmp.eq.s32.totalorder %s1457_s24, 1 }
  0x22   : > { %p1562_p2 = scmp.lt.s32.totalorder %s1934_s30, 2  ;;  %s2394_s14 = sand.u32 1, %s1930_s29  }
  0x23   : > { %p2073_p4 = por %p230_p13, %p43_p8  ;;  %p2077_p5 = por %p236_p0, %p49_p10 }
  0x24   : > { %s2083_s17 = sshll.u32 %s2394_s14, 3  ;;  %s2086_s18 = sshll.u32 %s1934_s30, 3 }
  0x25   : > { %p2088_p7 = pnand %p1562_p2, %p45_p11  ;;  %s334_s21 = sand.u32 1, %s1934_s30  }
  0x26   : > { %s2415_s1 = sld [smem:[#allocation24_spill]]  ;;  %s338_s23 = scalar_lea.vmem [#allocation6], %s2083_s17 }
  0x27   : > { %s346_s3 = sshll.u32 %s338_s23, 4  ;;  %s2098_s14 = scalar_lea.sflag [#allocation7], %s334_s21  ;;  %s347_s3 = int_to_ptr.vmem [resolvable:$true] %s346_s3 }
  0x28   : > { %p1710_p9 = pneg %p2088_p7 }
  0x2c   : > { %s342_s9 = scalar_lea.hbm %s2415_s1, %s2086_s18  ;;  %s1713_s26 = scalar_lea.hbm %s2415_s1, 16 }
  0x2d   : > { %s344_s22 = sshll.u32 %s342_s9, 4  ;;  %s345_s22 = int_to_ptr.hbm [resolvable:$true] %s344_s22 }
  0x2e   : > { %s1706_s5 = sshra.s32 %s345_s22, 4  ;;  %s1707_s5 = int_to_ptr.hbm [resolvable:$true] %s1706_s5 }
  0x2f   : > { %s1708_s10 = scalar_lea.hbm %s1707_s5, 8  ;;  %p1714_p13 = scmp.lt.s32.totalorder %s1707_s5, %s2415_s1 }
  0x30   : > { %p1709_p8 = scmp.ne.s32.totalorder %s1707_s5, %s1708_s10  ;;  %p1715_p0 = scmp.lt.s32.totalorder %s1713_s26, %s1708_s10 }
  0x32   : > { %p1711_p10 = pnand %p1710_p9, %p1709_p8  ;;  %p1716_p2 = por %p1715_p0, %p1714_p13 }
  0x34   : > { %p1712_p11 = pneg %p1711_p10 }
  0x36   : > { %p1717_p1 = pnand %p1716_p2, %p1712_p11 }
  0x38   : > { %1720 = shalt.err (!%p1717_p1)
}
  0x39   : > { %1550 = dma.hbm_to_vmem [thread:$0]  (!%p2088_p7), %s345_s22, 128, %s347_s3, %s2098_s14  }
  0x3a   : > { %s2416_s4 = sld [smem:[#allocation26_spill]]  ;;  %s1940_s24 = smov [#allocation11]  }
  0x3b   : > { %s270_s5 = sshll.u32 %s1940_s24, 4  ;;  %s2417_s6 = sld [smem:[#allocation28_spill]]  ;;  %s271_s5 = int_to_ptr.vmem [resolvable:$true] %s270_s5 }
  0x3c   : > { %s2418_s23 = smov 8   ;;  %s2419_s1 = smov 128  }
  0x3d   : > { %s1941_s3 = smov [#allocation14]   ;;  %s323_s24 = scalar_lea.hbm %s2381_s0, %s2086_s18 }
  0x3e   : > { %s298_s22 = sshll.u32 %s1941_s3, 4  ;;  %s319_s10 = scalar_lea.vmem [#allocation3], %s2083_s17  ;;  %s299_s22 = int_to_ptr.vmem [resolvable:$true] %s298_s22 }
  0x3f   : > { %s327_s26 = sshll.u32 %s319_s10, 4  ;;  %s328_s26 = int_to_ptr.vmem [resolvable:$true] %s327_s26 }
  0x40   : > { %s268_s25 = sshll.u32 %s2416_s4, 4  ;;  %s325_s4 = sshll.u32 %s323_s24, 4  ;;  %s269_s25 = int_to_ptr.hbm [resolvable:$true] %s268_s25  ;;  %s326_s4 = int_to_ptr.hbm [resolvable:$true] %s325_s4 }
  0x41   : > { %s296_s9 = sshll.u32 %s2417_s6, 4  ;;  %s1796_s6 = sshra.s32 %s326_s4, 4  ;;  %s297_s9 = int_to_ptr.hbm [resolvable:$true] %s296_s9  ;;  %s1797_s6 = int_to_ptr.hbm [resolvable:$true] %s1796_s6 }
  0x42   : > { %1537 = dma.hbm_to_vmem [thread:$0]  (!%p2035_p6), %s269_s25, 2048, %s271_s5, [#allocation10], %s2419_s1, %s2419_s1, %s2418_s23  }
  0x43   : > { %1543 = dma.hbm_to_vmem [thread:$0]  (!%p2035_p6), %s297_s9, 2048, %s299_s22, [#allocation13], %s2419_s1, %s2419_s1, %s2418_s23  }
  0x44   : > { %s2420_s25 = sand.u32 1, %s1930_s29   ;;  %s1798_s3 = scalar_lea.hbm %s1797_s6, 8 }
  0x45   : > { %s316_s5 = scalar_lea.sflag [#allocation4], %s2420_s25  ;;  %p1799_p1 = scmp.ne.s32.totalorder %s1797_s6, %s1798_s3 }
  0x46   : > { %s1803_s9 = scalar_lea.hbm %s2381_s0, 16  ;;  %p1804_p6 = scmp.lt.s32.totalorder %s1797_s6, %s2381_s0 }
  0x47   : > { %p1801_p8 = pnand %p1799_p1, %p1710_p9  ;;  %p1805_p11 = scmp.lt.s32.totalorder %s1803_s9, %s1798_s3 }
  0x49   : > { %p1802_p10 = pneg %p1801_p8  ;;  %p1806_p13 = por %p1805_p11, %p1804_p6 }
  0x4b   : > { %p1807_p0 = pnand %p1806_p13, %p1802_p10 }
  0x4d   : > { %1810 = shalt.err (!%p1807_p0)
}
  0x4e   : > { %1547 = dma.hbm_to_vmem [thread:$0]  (!%p2088_p7), %s326_s4, 128, %s328_s26, %s316_s5  }
  0x4f   : > { %s361_s24 = scalar_lea.hbm %s2383_s2, %s2086_s18  ;;  %s357_s10 = scalar_lea.vmem [#allocation8], %s2083_s17 }
  0x50   : > { %s365_s25 = sshll.u32 %s357_s10, 4  ;;  %s363_s1 = sshll.u32 %s361_s24, 4  ;;  %s366_s25 = int_to_ptr.vmem [resolvable:$true] %s365_s25  ;;  %s364_s1 = int_to_ptr.hbm [resolvable:$true] %s363_s1 }
  0x51   : > { %s1826_s6 = sshra.s32 %s364_s1, 4  ;;  %s1833_s4 = scalar_lea.hbm %s2383_s2, 16  ;;  %s1827_s6 = int_to_ptr.hbm [resolvable:$true] %s1826_s6 }
  0x52   : > { %s1828_s3 = scalar_lea.hbm %s1827_s6, 8  ;;  %p1834_p10 = scmp.lt.s32.totalorder %s1827_s6, %s2383_s2 }
  0x53   : > { %p1829_p2 = scmp.ne.s32.totalorder %s1827_s6, %s1828_s3  ;;  %p1835_p6 = scmp.lt.s32.totalorder %s1833_s4, %s1828_s3 }
  0x55   : > { %p1831_p1 = pnand %p1829_p2, %p1710_p9  ;;  %p1836_p11 = por %p1835_p6, %p1834_p10 }
  0x57   : > { %p1832_p8 = pneg %p1831_p1 }
  0x59   : > { %p1837_p13 = pnand %p1836_p11, %p1832_p8 }
  0x5b   : > { %1840 = shalt.err (!%p1837_p13)
}
  0x5c   : > { %1553 = dma.hbm_to_vmem [thread:$0]  (!%p2088_p7), %s364_s1, 128, %s366_s25, %s2098_s14  }
  0x5d   : > { %374 = sbr.rel (%p2023_p3) target bundleno = 1593 (0x639), region = 52  ;;  %s2168_s17 = sand.u32 (!%p2023_p3), 1, %s1926_s28  }
  0x5e   : > { %s2171_s18 = sshll.u32 (!%p2023_p3), %s2168_s17, 3  ;;  %s377_s23 = scalar_lea.sflag (!%p2023_p3), [#allocation4], %s2168_s17 }
  0x5f   : > { %s380_s22 = scalar_lea.vmem (!%p2023_p3), [#allocation3], %s2171_s18 }
  0x62   : > { %1901 = dma.done.wait (%p2066_p12), %s377_s23, 128  }
  0x63   : > { %1903 = vsyncadd (%p2066_p12), %s377_s23, 4294967168  ;;  %s386_s13 = sand.u32 1, %s2018_s12   ;;  %s390_s20 = scalar_lea.vmem [#allocation6], %s2171_s18 }
  0x64   : > { %s387_s14 = scalar_lea.sflag [#allocation7], %s386_s13 }
  0x65   : > { %1905 = dma.done.wait (%p2066_p12), %s387_s14, 256  }
  0x66   : > { %1907 = vsyncadd (%p2066_p12), %s387_s14, 4294967040  ;;  %s400_s30 = scalar_lea.vmem [#allocation8], %s2171_s18  ;;  %p2421_p3 = scmp.eq.s32.totalorder %s2018_s12, 0 }
  0x68   : > { %1909 = dma.done.wait (%p2421_p3), [#allocation10], 4096   ;;  %p2422_p7 = pmov %p2421_p3 }
  0x69   : > { %p2423_p9 = pmov %p2421_p3 }
  0x6a   : > { %1911 = vsyncadd (%p2422_p7), [#allocation10], 4294963200 }
  0x6b   : > { %1913 = dma.done.wait (%p2423_p9), [#allocation13], 4096   ;;  %p2424_p0 = pmov %p2421_p3 }
  0x6c   : > { %v518_v0 = vld [vmem:[#allocation11 + $0x78] sm:$0xff]  ;;  %v517_v2 = vld [vmem:[#allocation11 + $0x70] sm:$0xff]  ;;  %v516_v5 = vld [vmem:[#allocation11 + $0x68] sm:$0xff]  ;;  %vm575_vm0 = vcmask 130048   ;;  %s1942_s11 = smov 112   ;;  %s1943_s21 = smov 96  }
  0x6d   : > { %1915 = vsyncadd (%p2424_p0), [#allocation13], 4294963200  ;;  %v554_v1 = vld [vmem:[#allocation12 + $0x78] sm:$0xff]  ;;  %519 = vmatpush.msra.mxu1 %v518_v0  ;;  %v553_v3 = vld [vmem:[#allocation12 + $0x70] sm:$0xff]  ;;  %s1944_s24 = smov 80   ;;  %s1945_s10 = smov 64  }
  0x6e   : > { %555 = vmatpush.msra.mxu2 %v554_v1  ;;  %v482_v4 = vld [vmem:[#allocation9 + $0x78] sm:$0xff]  ;;  %v552_v6 = vld [vmem:[#allocation12 + $0x68] sm:$0xff]  ;;  %v481_v7 = vld [vmem:[#allocation9 + $0x70] sm:$0xff]  ;;  %s1946_s25 = smov 48   ;;  %s1947_s1 = smov 32   ;;  %vm603_vm1 = vcmask 64512  }
  0x6f   : > { %483 = vmatpush.msra.mxu0 %v482_v4  ;;  %520 = vmatpush.msra.mxu1 %v517_v2  ;;  %v480_v8 = vld [vmem:[#allocation9 + $0x68] sm:$0xff]  ;;  %v515_v9 = vld [vmem:[#allocation11 + $0x60] sm:$0xff]  ;;  %v514_v12 = vld [vmem:[#allocation11 + $0x58] sm:$0xff]  ;;  %s1948_s6 = smov 16   ;;  %s1504_s3 = sshll.u32 %s2018_s12, 3 }
  0x70   : > { %556 = vmatpush.msra.mxu2 %v553_v3  ;;  %v551_v10 = vld [vmem:[#allocation12 + $0x60] sm:$0xff]  ;;  %v550_v13 = vld [vmem:[#allocation12 + $0x58] sm:$0xff]  ;;  %v513_v15 = vld [vmem:[#allocation11 + $0x50] sm:$0xff]  ;;  %s1301_s4 = scalar_lea.hbm %s2389_s8, %s1504_s3  ;;  %s463_s23 = scalar_lea.vmem [#allocation15], %s2171_s18 }
  0x71   : > { %484 = vmatpush.msra.mxu0 %v481_v7  ;;  %521 = vmatpush.msra.mxu1 %v516_v5  ;;  %v479_v11 = vld [vmem:[#allocation9 + $0x60] sm:$0xff]  ;;  %v478_v14 = vld [vmem:[#allocation9 + $0x58] sm:$0xff]  ;;  %v549_v16 = vld [vmem:[#allocation12 + $0x50] sm:$0xff]  ;;  %s1305_s13 = sshll.u32 %s1301_s4, 4  ;;  %s1291_s14 = scalar_lea.sflag [#allocation5], %s2168_s17  ;;  %s1306_s13 = int_to_ptr.hbm [resolvable:$true] %s1305_s13 }
  0x72   : > { %557 = vmatpush.msra.mxu2 %v552_v6  ;;  %v477_v17 = vld [vmem:[#allocation9 + $0x50] sm:$0xff]  ;;  %v512_v18 = vld [vmem:[#allocation11 + $0x48] sm:$0xff]  ;;  %v511_v21 = vld [vmem:[#allocation11 + $0x40] sm:$0xff] }
  0x73   : > { %485 = vmatpush.msra.mxu0 %v480_v8  ;;  %522 = vmatpush.msra.mxu1 %v515_v9  ;;  %v548_v19 = vld [vmem:[#allocation12 + $0x48] sm:$0xff]  ;;  %v547_v22 = vld [vmem:[#allocation12 + $0x40] sm:$0xff]  ;;  %v510_v24 = vld [vmem:[#allocation11 + $0x38] sm:$0xff] }
  0x74   : > { %558 = vmatpush.msra.mxu2 %v551_v10  ;;  %v476_v20 = vld [vmem:[#allocation9 + $0x48] sm:$0xff]  ;;  %v475_v23 = vld [vmem:[#allocation9 + $0x40] sm:$0xff]  ;;  %v546_v25 = vld [vmem:[#allocation12 + $0x38] sm:$0xff] }
  0x75   : > { %486 = vmatpush.msra.mxu0 %v479_v11  ;;  %523 = vmatpush.msra.mxu1 %v514_v12  ;;  %v474_v26 = vld [vmem:[#allocation9 + $0x38] sm:$0xff]  ;;  %v509_v27 = vld [vmem:[#allocation11 + $0x30] sm:$0xff]  ;;  %v508_v30 = vld [vmem:[#allocation11 + $0x28] sm:$0xff] }
  0x76   : > { %559 = vmatpush.msra.mxu2 %v550_v13  ;;  %v545_v28 = vld [vmem:[#allocation12 + $0x30] sm:$0xff]  ;;  %v544_v31 = vld [vmem:[#allocation12 + $0x28] sm:$0xff]  ;;  %v507_v33 = vld [vmem:[#allocation11 + $0x20] sm:$0xff] }
  0x77   : > { %487 = vmatpush.msra.mxu0 %v478_v14  ;;  %524 = vmatpush.msra.mxu1 %v513_v15  ;;  %v473_v29 = vld [vmem:[#allocation9 + $0x30] sm:$0xff]  ;;  %v472_v32 = vld [vmem:[#allocation9 + $0x28] sm:$0xff]  ;;  %v543_v34 = vld [vmem:[#allocation12 + $0x20] sm:$0xff] }
  0x78   : > { %560 = vmatpush.msra.mxu2 %v549_v16  ;;  %v471_v35 = vld [vmem:[#allocation9 + $0x20] sm:$0xff]  ;;  %v506_v36 = vld [vmem:[#allocation11 + $0x18] sm:$0xff]  ;;  %v505_v39 = vld [vmem:[#allocation11 + $0x10] sm:$0xff] }
  0x79   : > { %488 = vmatpush.msra.mxu0 %v477_v17  ;;  %525 = vmatpush.msra.mxu1 %v512_v18  ;;  %v542_v37 = vld [vmem:[#allocation12 + $0x18] sm:$0xff]  ;;  %v541_v40 = vld [vmem:[#allocation12 + $0x10] sm:$0xff]  ;;  %v504_v42 = vld [vmem:[#allocation11 + $0x8] sm:$0xff] }
  0x7a   : > { %561 = vmatpush.msra.mxu2 %v548_v19  ;;  %v470_v38 = vld [vmem:[#allocation9 + $0x18] sm:$0xff]  ;;  %v469_v41 = vld [vmem:[#allocation9 + $0x10] sm:$0xff]  ;;  %v540_v43 = vld [vmem:[#allocation12 + $0x8] sm:$0xff] }
  0x7b   : > { %489 = vmatpush.msra.mxu0 %v476_v20  ;;  %526 = vmatpush.msra.mxu1 %v511_v21  ;;  %v468_v44 = vld [vmem:[#allocation9 + $0x8] sm:$0xff]  ;;  %v503_v45 = vld [vmem:[#allocation11] sm:$0xff]  ;;  %v466_v48 = vld [vmem:[%s400_s30] sm:$0xff] }
  0x7c   : > { %562 = vmatpush.msra.mxu2 %v547_v22  ;;  %v539_v46 = vld [vmem:[#allocation12] sm:$0xff]  ;;  %v464_v50 = vld [vmem:[%s380_s22] sm:$0xff]  ;;  %s1303_s22 = sshll.u32 %s463_s23, 4  ;;  %s1304_s22 = int_to_ptr.vmem [resolvable:$true] %s1303_s22 }
  0x7d   : > { %490 = vmatpush.msra.mxu0 %v475_v23  ;;  %527 = vmatpush.msra.mxu1 %v510_v24  ;;  %v465_v47 = vld [vmem:[%s390_s20] sm:$0xff]  ;;  %s1870_s20 = sshra.s32 %s1306_s13, 4  ;;  %s1871_s20 = int_to_ptr.hbm [resolvable:$true] %s1870_s20 }
  0x7e   : > { %563 = vmatpush.msra.mxu2 %v546_v25  ;;  %v467_v49 = vld [vmem:[#allocation9] sm:$0xff]  ;;  %s1872_s12 = scalar_lea.hbm %s1871_s20, 8  ;;  %p1877_p8 = scmp.lt.s32.totalorder %s1871_s20, %s2389_s8 }
  0x7f   : > { %491 = vmatpush.msra.mxu0 %v474_v26  ;;  %528 = vmatpush.msra.mxu1 %v509_v27  ;;  %p1873_p12 = scmp.ne.s32.totalorder %s1871_s20, %s1872_s12 }
  0x80   : > { %564 = vmatpush.msra.mxu2 %v545_v28 }
  0x81   : > { %492 = vmatpush.msra.mxu0 %v473_v29  ;;  %529 = vmatpush.msra.mxu1 %v508_v30  ;;  %p1874_p2 = pnand %p1873_p12, %p2073_p4 }
  0x82   : > { %565 = vmatpush.msra.mxu2 %v544_v31 }
  0x83   : > { %493 = vmatpush.msra.mxu0 %v472_v32  ;;  %530 = vmatpush.msra.mxu1 %v507_v33  ;;  %p1875_p1 = pneg %p1874_p2 }
  0x84   : > { %566 = vmatpush.msra.mxu2 %v543_v34 }
  0x85   : > { %494 = vmatpush.msra.mxu0 %v471_v35  ;;  %531 = vmatpush.msra.mxu1 %v506_v36 }
  0x86   : > { %567 = vmatpush.msra.mxu2 %v542_v37 }
  0x87   : > { %495 = vmatpush.msra.mxu0 %v470_v38  ;;  %532 = vmatpush.msra.mxu1 %v505_v39 }
  0x88   : > { %568 = vmatpush.msra.mxu2 %v541_v40 }
  0x89   : > { %496 = vmatpush.msra.mxu0 %v469_v41  ;;  %533 = vmatpush.msra.mxu1 %v504_v42 }
  0x8a   : > { %569 = vmatpush.msra.mxu2 %v540_v43 }
  0x8b   : > { %497 = vmatpush.msra.mxu0 %v468_v44  ;;  %534 = vmatpush.msra.mxu1 %v503_v45 }
  0x8c   : > { %570 = vmatpush.msra.mxu2 %v539_v46  ;;  %535 = vmatmul.f32.vlgmr.msra.gmra.mxu1 %v465_v47 }
  0x8d   : > { %571 = vmatmul.f32.vlgmr.msra.gmra.mxu2 %v466_v48  ;;  %498 = vmatpush.msra.mxu0 %v467_v49 }
  0x8e   : > { %499 = vmatmul.f32.vlgmr.msra.gmra.mxu0 %v464_v50 }
 0x109   : > { %v536_v51 = vpop.f32.mrf.mxu1 }
 0x10a   : > { %654 = vrot.lane.b32.xlu0 %v536_v51, %s1942_s11  ;;  %1479 = vmatpush.xpose.msk.msrb.mxu0 %vm575_vm0, %v536_v51 }
 0x10b   : > { %v2202_v52 = vpop.f32.mrf.mxu0 }
 0x10d   : > { %1480 = vmatmul.msk.f32.vlgmr.msrb.gmra.mxu0 %vm575_vm0, %v2202_v52 }
 0x110   : > { %v2206_v53 = vpop.f32.mrf.mxu2 }
 0x111   : > { %706 = vrot.lane.b32.xlu2 %v2206_v53, %s1942_s11  ;;  %646 = vmatpush.msrb.mxu2 %v2206_v53 }
 0x112   : > { %652 = vrot.lane.b32.xlu0 %v2202_v52, %s1942_s11 }
 0x119   : > { %740 = vrot.lane.b32.xlu2 %v536_v51, %s1943_s21 }
 0x11a   : > { %825 = vrot.lane.b32.xlu0 %v536_v51, %s1944_s24 }
 0x121   : > { %823 = vrot.lane.b32.xlu2 %v2202_v52, %s1944_s24 }
 0x122   : > { %910 = vrot.lane.b32.xlu0 %v536_v51, %s1945_s10 }
 0x129   : > { %995 = vrot.lane.b32.xlu2 %v536_v51, %s1946_s25 }
 0x12a   : > { %908 = vrot.lane.b32.xlu0 %v2202_v52, %s1945_s10 }
 0x131   : > { %993 = vrot.lane.b32.xlu2 %v2202_v52, %s1946_s25 }
 0x132   : > { %1080 = vrot.lane.b32.xlu0 %v536_v51, %s1947_s1 }
 0x139   : > { %1165 = vrot.lane.b32.xlu2 %v536_v51, %s1948_s6 }
 0x13a   : > { %1163 = vrot.lane.b32.xlu0 %v2202_v52, %s1948_s6 }
 0x16b   : > { %v707_v54 = vpop.permute.xlu2 %706 }
 0x16c   : > { %727 = vmatpush.msra.mxu3 %v707_v54 }
 0x173   : > { %v741_v55 = vpop.permute.xlu2 %740 }
 0x174   : > { %1485 = vmatpush.xpose.msk.msrb.mxu3 %vm575_vm0, %v741_v55 }
 0x17b   : > { %v824_v56 = vpop.permute.xlu2 %823 }
 0x17c   : > { %v655_v57 = vpop.permute.xlu0 %654 }
 0x17d   : > { %1482 = vmatpush.xpose.msk.msrb.mxu1 %vm575_vm0, %v655_v57 }
 0x183   : > { %v996_v58 = vpop.permute.xlu2 %995 }
 0x184   : > { %v653_v59 = vpop.permute.xlu0 %652 }
 0x185   : > { %1483 = vmatmul.msk.f32.vlgmr.msrb.gmra.mxu1 %vm575_vm0, %v653_v59 }
 0x18a   : > { %v599_v61 = vpop.f32.mrf.mxu0 }
 0x18b   : > { %v994_v60 = vpop.permute.xlu2 %993  ;;  %v2230_v62 = vmul.f32 0.088388346, %v599_v61 }
 0x18c   : > { %v826_v63 = vpop.permute.xlu0 %825 }
 0x18d   : > { %1488 = vmatpush.xpose.msk.msra.mxu1 %vm575_vm0, %v826_v63  ;;  %v604_v0 = vsel %vm603_vm1, %v2230_v62, -inf }
 0x18e   : > { %605 = vmax.xlane.f32.xlu2 %v604_v0 }
 0x190   : > { %1489 = vmatmul.msk.f32.vlgmr.msra.gmra.mxu1 %vm575_vm0, %v824_v56 }
 0x191   : > { %1494 = vmatpush.xpose.msk.msrb.mxu1 %vm575_vm0, %v996_v58 }
 0x193   : > { %v1166_v1 = vpop.permute.xlu2 %1165 }
 0x194   : > { %v911_v2 = vpop.permute.xlu0 %910 }
 0x195   : > { %1500 = vmatpush.xpose.msk.msra.mxu1 %vm575_vm0, %v1166_v1 }
 0x198   : > { %1495 = vmatmul.msk.f32.vlgmr.msrb.gmra.mxu1 %vm575_vm0, %v994_v60 }
 0x19c   : > { %v909_v3 = vpop.permute.xlu0 %908 }
 0x1a4   : > { %v1081_v4 = vpop.permute.xlu0 %1080 }
 0x1ac   : > { %v1164_v5 = vpop.permute.xlu0 %1163 }
 0x1ad   : > { %1501 = vmatmul.msk.f32.vlgmr.msra.gmra.mxu1 %vm575_vm0, %v1164_v5 }
 0x201   : > { %v606_v42 = vpop.xlane.xlu2 %605 }
 0x202   : > { %v677_v6 = vpop.f32.mrf.mxu1  ;;  %v607_v50 = vsub.f32 %v2230_v62, %v606_v42 }
 0x203   : > { %v680_v7 = vmul.f32 0.088388346, %v677_v6 }
 0x205   : > { %v681_v8 = vsel %vm603_vm1, %v680_v7, -inf }
 0x206   : > { %682 = vmax.xlane.f32.xlu1 %v681_v8 }
 0x20d   : > { %v848_v9 = vpop.f32.mrf.mxu1 }
 0x20e   : > { %v851_v21 = vmul.f32 0.088388346, %v848_v9 }
 0x210   : > { %v852_v22 = vsel %vm603_vm1, %v851_v21, -inf }
 0x215   : > { %v1018_v10 = vpop.f32.mrf.mxu1 }
 0x216   : > { %v2241_v11 = vmul.f32 0.088388346, %v1018_v10 }
 0x218   : > { %v1022_v12 = vsel %vm603_vm1, %v2241_v11, -inf }
 0x219   : > { %1023 = vmax.xlane.f32.xlu2 %v1022_v12 }
 0x22a   : > { %v1188_v13 = vpop.f32.mrf.mxu1 }
 0x22b   : > { %v1191_v14 = vmul.f32 0.088388346, %v1188_v13 }
 0x22d   : > { %v1192_v15 = vsel %vm603_vm1, %v1191_v14, -inf }
 0x22e   : > { %1193 = vmax.xlane.f32.xlu2 %v1192_v15 }
 0x279   : > { %v683_v16 = vpop.xlane.xlu1 %682 }
 0x27a   : > { %v684_v17 = vsub.f32 %v680_v7, %v683_v16 }
 0x27c   : > { %v685_v18 = vmul.f32 1.442695, %v684_v17 }
 0x27e   : > { %1614 = vpow2.f32 %v685_v18 }
 0x284   : > { %v1615_v19 = vpop.eup %1614 }
 0x285   : > { %v687_v20 = vsel %vm603_vm1, %v1615_v19, 0.0 }
 0x286   : > { %688 = vadd.xlane.f32.xlu1 %v687_v20 }
 0x28c   : > { %v1024_v43 = vpop.xlane.xlu2 %1023 }
 0x28d   : > { %v1025_v57 = vsub.f32 %v2241_v11, %v1024_v43 }
 0x28f   : > { %v1026_v60 = vmul.f32 1.442695, %v1025_v57 }
 0x29f   : > { %738 = vrot.lane.b32.xlu1 %v2202_v52, %s1943_s21 }
 0x2a1   : > { %v1194_v44 = vpop.xlane.xlu2 %1193 }
 0x2a2   : > { %v1195_v46 = vsub.f32 %v1191_v14, %v1194_v44 }
 0x2a4   : > { %v1196_v47 = vmul.f32 1.442695, %v1195_v46 }
 0x2a7   : > { %1078 = vrot.lane.b32.xlu1 %v2202_v52, %s1947_s1  ;;  %v608_v52 = vmul.f32 1.442695, %v607_v50 }
 0x2d1   : > { %853 = vmax.xlane.f32.xlu1 %v852_v22 }
 0x2f9   : > { %v689_v23 = vpop.xlane.xlu1 %688 }
 0x2fa   : > { %1616 = vrcp.f32 %v689_v23  ;;  %v701_v27 = vand.u32 2147483648, %v689_v23  ;;  %v699_v29 = vand.u32 2147483647, %v689_v23  ;;  %vm695_vm3 = vweird.f32 %v689_v23 }
 0x2fc   : > { %v702_v31 = vor.u32 1.1754944e-38, %v701_v27  ;;  %vm700_vm5 = vcmp.eq.f32.partialorder %v699_v29, 8.507059e+37 }
 0x300   : > { %v1617_v24 = vpop.eup %1616 }
 0x301   : > { %v691_v25 = vmul.f32 %v1617_v24, %v689_v23  ;;  %vm696_vm2 = vweird.f32 %v1617_v24 }
 0x302   : > { %vm697_vm4 = vmor %vm695_vm3, %vm696_vm2 }
 0x303   : > { %v692_v26 = vsub.f32 1.0, %v691_v25 }
 0x305   : > { %v693_v28 = vmul.f32 %v1617_v24, %v692_v26 }
 0x307   : > { %v694_v30 = vadd.f32 %v1617_v24, %v693_v28 }
 0x309   : > { %v698_v32 = vsel %vm697_vm4, %v1617_v24, %v694_v30 }
 0x30a   : > { %v703_v33 = vsel %vm700_vm5, %v702_v31, %v698_v32 }
 0x30b   : > { %v704_v34 = vmul.f32 %v1615_v19, %v703_v33 }
 0x30d   : > { %1484 = vmatmul.msk.f32.vlgmr.msra.gmra.mxu3 %vm603_vm1, %v704_v34 }
 0x30e   : > { %1491 = vmatpush.xpose.msk.msra.mxu3 %vm575_vm0, %v911_v2 }
 0x311   : > { %v739_v35 = vpop.permute.xlu1 %738 }
 0x315   : > { %1486 = vmatmul.msk.f32.vlgmr.msrb.gmra.mxu3 %vm575_vm0, %v739_v35 }
 0x316   : > { %1497 = vmatpush.xpose.msk.msrb.mxu3 %vm575_vm0, %v1081_v4 }
 0x319   : > { %v1079_v36 = vpop.permute.xlu1 %1078 }
 0x31d   : > { %1492 = vmatmul.msk.f32.vlgmr.msra.gmra.mxu3 %vm575_vm0, %v909_v3 }
 0x325   : > { %1498 = vmatmul.msk.f32.vlgmr.msrb.gmra.mxu3 %vm575_vm0, %v1079_v36 }
 0x344   : > { %v854_v37 = vpop.xlane.xlu1 %853 }
 0x345   : > { %v855_v38 = vsub.f32 %v851_v21, %v854_v37 }
 0x347   : > { %v856_v39 = vmul.f32 1.442695, %v855_v38 }
 0x349   : > { %1618 = vpow2.f32 %v856_v39 }
 0x34a   : > { %1620 = vpow2.f32 %v1196_v47 }
 0x34b   : > { %1622 = vpow2.f32 %v608_v52 }
 0x34c   : > { %1624 = vpow2.f32 %v1026_v60 }
 0x34f   : > { %v2258_v40 = vpop.eup %1618 }
 0x350   : > { %v858_v41 = vsel %vm603_vm1, %v2258_v40, 0.0  ;;  %v2266_v54 = vpop.eup %1620 }
 0x351   : > { %859 = vadd.xlane.f32.xlu2 %v858_v41  ;;  %v1198_v59 = vsel %vm603_vm1, %v2266_v54, 0.0  ;;  %v1623_v61 = vpop.eup %1622 }
 0x352   : > { %v610_v0 = vsel %vm603_vm1, %v1623_v61, 0.0  ;;  %v2274_v2 = vpop.eup %1624 }
 0x353   : > { %v1028_v3 = vsel %vm603_vm1, %v2274_v2, 0.0 }
 0x390   : > { %v2262_v45 = vpop.f32.mrf.mxu3 }
 0x398   : > { %v763_v48 = vpop.f32.mrf.mxu3 }
 0x399   : > { %v766_v49 = vmul.f32 0.088388346, %v763_v48 }
 0x39b   : > { %v767_v51 = vsel %vm603_vm1, %v766_v49, -inf }
 0x39c   : > { %768 = vmax.xlane.f32.xlu0 %v767_v51 }
 0x3a0   : > { %v933_v55 = vpop.f32.mrf.mxu3 }
 0x3a1   : > { %v936_v56 = vmul.f32 0.088388346, %v933_v55 }
 0x3a3   : > { %v937_v58 = vsel %vm603_vm1, %v936_v56, -inf }
 0x3a4   : > { %938 = vmax.xlane.f32.xlu1 %v937_v58  ;;  %1199 = vadd.xlane.f32.xlu0 %v1198_v59 }
 0x3a8   : > { %v1103_v62 = vpop.f32.mrf.mxu3 }
 0x3a9   : > { %v1106_v63 = vmul.f32 0.088388346, %v1103_v62 }
 0x3ab   : > { %v1107_v1 = vsel %vm603_vm1, %v1106_v63, -inf }
 0x3ac   : > { %611 = vadd.xlane.f32.xlu1 %v610_v0  ;;  %1108 = vmax.xlane.f32.xlu0 %v1107_v1 }
 0x3b4   : > { %1029 = vadd.xlane.f32.xlu1 %v1028_v3 }
 0x3c0   : > { %791 = vrot.lane.b32.xlu0 %v2206_v53, %s1943_s21 }
 0x3c4   : > { %v860_v13 = vpop.xlane.xlu2 %859 }
 0x3c5   : > { %v872_v39 = vand.u32 2147483648, %v860_v13  ;;  %vm866_vm11 = vweird.f32 %v860_v13  ;;  %v870_v41 = vand.u32 2147483647, %v860_v13 }
 0x3c7   : > { %v873_v44 = vor.u32 1.1754944e-38, %v872_v39  ;;  %vm871_vm13 = vcmp.eq.f32.partialorder %v870_v41, 8.507059e+37 }
 0x3cd   : > { %876 = vrot.lane.b32.xlu1 %v2206_v53, %s1944_s24 }
 0x3d5   : > { %961 = vrot.lane.b32.xlu1 %v2206_v53, %s1945_s10 }
 0x3dd   : > { %1131 = vrot.lane.b32.xlu1 %v2206_v53, %s1947_s1 }
 0x40f   : > { %v769_v4 = vpop.xlane.xlu0 %768 }
 0x410   : > { %v770_v5 = vsub.f32 %v766_v49, %v769_v4 }
 0x412   : > { %v771_v6 = vmul.f32 1.442695, %v770_v5 }
 0x414   : > { %1626 = vpow2.f32 %v771_v6 }
 0x417   : > { %v939_v7 = vpop.xlane.xlu1 %938  ;;  %v2286_v8 = vpop.xlane.xlu0 %1199 }
 0x418   : > { %v940_v9 = vsub.f32 %v936_v56, %v939_v7 }
 0x41a   : > { %v2288_v10 = vpop.eup %1626  ;;  %v941_v11 = vmul.f32 1.442695, %v940_v9 }
 0x41b   : > { %v773_v12 = vsel %vm603_vm1, %v2288_v10, 0.0 }
 0x41c   : > { %1628 = vpow2.f32 %v941_v11  ;;  %774 = vadd.xlane.f32.xlu0 %v773_v12 }
 0x41d   : > { %1630 = vrcp.f32 %v860_v13 }
 0x41f   : > { %v612_v14 = vpop.xlane.xlu1 %611  ;;  %v1109_v15 = vpop.xlane.xlu0 %1108 }
 0x420   : > { %1632 = vrcp.f32 %v612_v14  ;;  %v1110_v16 = vsub.f32 %v1106_v63, %v1109_v15  ;;  %v624_v25 = vand.u32 2147483648, %v612_v14  ;;  %v622_v28 = vand.u32 2147483647, %v612_v14 }
 0x421   : > { %vm618_vm7 = vweird.f32 %v612_v14 }
 0x422   : > { %v2292_v17 = vpop.eup %1628  ;;  %v1111_v18 = vmul.f32 1.442695, %v1110_v16  ;;  %v625_v32 = vor.u32 1.1754944e-38, %v624_v25  ;;  %vm623_vm9 = vcmp.eq.f32.partialorder %v622_v28, 8.507059e+37 }
 0x423   : > { %v943_v19 = vsel %vm603_vm1, %v2292_v17, 0.0  ;;  %v1631_v20 = vpop.eup %1630 }
 0x424   : > { %944 = vadd.xlane.f32.xlu2 %v943_v19  ;;  %1634 = vpow2.f32 %v1111_v18  ;;  %v862_v23 = vmul.f32 %v1631_v20, %v860_v13  ;;  %vm867_vm10 = vweird.f32 %v1631_v20 }
 0x425   : > { %vm868_vm12 = vmor %vm866_vm11, %vm867_vm10 }
 0x426   : > { %v1633_v21 = vpop.eup %1632  ;;  %v863_v30 = vsub.f32 1.0, %v862_v23 }
 0x427   : > { %v614_v22 = vmul.f32 %v1633_v21, %v612_v14  ;;  %vm619_vm6 = vweird.f32 %v1633_v21  ;;  %v1030_v42 = vpop.xlane.xlu1 %1029 }
 0x428   : > { %vm620_vm8 = vmor %vm618_vm7, %vm619_vm6  ;;  %v864_v35 = vmul.f32 %v1631_v20, %v863_v30  ;;  %1636 = vrcp.f32 %v1030_v42  ;;  %v1042_v5 = vand.u32 2147483648, %v1030_v42  ;;  %vm1036_vm5 = vweird.f32 %v1030_v42 }
 0x429   : > { %v615_v24 = vsub.f32 1.0, %v614_v22  ;;  %v1040_v9 = vand.u32 2147483647, %v1030_v42  ;;  %v1210_v30 = vand.u32 2147483647, %v2286_v8 }
 0x42a   : > { %v2296_v26 = vpop.eup %1634  ;;  %v865_v38 = vadd.f32 %v1631_v20, %v864_v35  ;;  %v1043_v19 = vor.u32 1.1754944e-38, %v1042_v5  ;;  %v1253_v5 = vld [vmem:[#allocation14 + $0x20] sm:$0xff] }
 0x42b   : > { %v616_v27 = vmul.f32 %v1633_v21, %v615_v24  ;;  %v1113_v29 = vsel %vm603_vm1, %v2296_v26, 0.0 }
 0x42c   : > { %1114 = vadd.xlane.f32.xlu2 %v1113_v29  ;;  %v869_v43 = vsel %vm868_vm12, %v1631_v20, %v865_v38  ;;  %vm1206_vm12 = vweird.f32 %v2286_v8 }
 0x42d   : > { %v617_v31 = vadd.f32 %v1633_v21, %v616_v27  ;;  %v874_v46 = vsel %vm871_vm13, %v873_v44, %v869_v43 }
 0x42e   : > { %v875_v48 = vmul.f32 %v2258_v40, %v874_v46  ;;  %v1637_v50 = vpop.eup %1636 }
 0x42f   : > { %v621_v33 = vsel %vm620_vm8, %v1633_v21, %v617_v31  ;;  %vm1037_vm2 = vweird.f32 %v1637_v50  ;;  %vm1041_vm8 = vcmp.eq.f32.partialorder %v1040_v9, 8.507059e+37  ;;  %v1250_v9 = vld [vmem:[#allocation14 + $0x8] sm:$0xff] }
 0x430   : > { %1216 = vrot.lane.b32.xlu0 %v2206_v53, %s1948_s6  ;;  %v626_v34 = vsel %vm623_vm9, %v625_v32, %v621_v33  ;;  %vm1038_vm6 = vmor %vm1036_vm5, %vm1037_vm2 }
 0x431   : > { %v627_v36 = vmul.f32 %v1623_v61, %v626_v34 }
 0x432   : > { %v792_v37 = vpop.permute.xlu0 %791 }
 0x433   : > { %1481 = vmatmul.msk.f32.vlgmr.msrb.gmra.mxu2 %vm603_vm1, %v627_v36  ;;  %812 = vmatpush.msra.mxu0 %v792_v37 }
 0x438   : > { %733 = vrot.lane.b32.xlu0 %v2262_v45, %s1948_s6  ;;  %v1032_v45 = vmul.f32 %v1637_v50, %v1030_v42 }
 0x43a   : > { %v1033_v55 = vsub.f32 1.0, %v1032_v45 }
 0x43c   : > { %v1034_v59 = vmul.f32 %v1637_v50, %v1033_v55 }
 0x43e   : > { %v1035_v3 = vadd.f32 %v1637_v50, %v1034_v59  ;;  %v1260_v59 = vld [vmem:[#allocation14 + $0x58] sm:$0xff] }
 0x43f   : > { %v877_v47 = vpop.permute.xlu1 %876 }
 0x440   : > { %897 = vmatpush.msra.mxu2 %v877_v47  ;;  %v1039_v15 = vsel %vm1038_vm6, %v1637_v50, %v1035_v3  ;;  %vm736_vm6 = vcmask 261248   ;;  %v1255_v3 = vld [vmem:[#allocation14 + $0x30] sm:$0xff] }
 0x441   : > { %1490 = vmatmul.msk.f32.vlgmr.msra.gmra.mxu2 %vm603_vm1, %v875_v48  ;;  %v1044_v23 = vsel %vm1041_vm8, %v1043_v19, %v1039_v15  ;;  %vm1076_vm8 = vcmask 786048  }
 0x442   : > { %v1045_v34 = vmul.f32 %v2274_v2, %v1044_v23 }
 0x444   : > { %1046 = vrot.lane.b32.xlu2 %v2206_v53, %s1946_s25 }
 0x447   : > { %v962_v49 = vpop.permute.xlu1 %961 }
 0x448   : > { %982 = vmatpush.msrb.mxu0 %v962_v49 }
 0x44f   : > { %v1132_v22 = vpop.permute.xlu1 %1131 }
 0x48f   : > { %v775_v51 = vpop.xlane.xlu0 %774 }
 0x490   : > { %1638 = vrcp.f32 %v775_v51  ;;  %v787_v60 = vand.u32 2147483648, %v775_v51  ;;  %v785_v62 = vand.u32 2147483647, %v775_v51  ;;  %vm781_vm15 = vweird.f32 %v775_v51 }
 0x491   : > { %1640 = vrcp.f32 %v2286_v8 }
 0x492   : > { %v788_v4 = vor.u32 1.1754944e-38, %v787_v60  ;;  %vm786_vm4 = vcmp.eq.f32.partialorder %v785_v62, 8.507059e+37  ;;  %v1259_v60 = vld [vmem:[#allocation14 + $0x50] sm:$0xff] }
 0x496   : > { %v1639_v52 = vpop.eup %1638 }
 0x497   : > { %v2310_v56 = vpop.eup %1640  ;;  %v777_v40 = vmul.f32 %v1639_v52, %v775_v51  ;;  %v945_v57 = vpop.xlane.xlu2 %944  ;;  %vm782_vm14 = vweird.f32 %v1639_v52 }
 0x498   : > { %1642 = vrcp.f32 %v945_v57  ;;  %v1202_v53 = vmul.f32 %v2310_v56, %v2286_v8  ;;  %vm783_vm3 = vmor %vm781_vm15, %vm782_vm14  ;;  %v957_v16 = vand.u32 2147483648, %v945_v57  ;;  %v955_v21 = vand.u32 2147483647, %v945_v57 }
 0x499   : > { %v778_v58 = vsub.f32 1.0, %v777_v40  ;;  %vm951_vm9 = vweird.f32 %v945_v57  ;;  %vm1207_vm10 = vweird.f32 %v2310_v56  ;;  %vm1211_vm15 = vcmp.eq.f32.partialorder %v1210_v30, 8.507059e+37  ;;  %v1264_v40 = vld [vmem:[#allocation14 + $0x78] sm:$0xff] }
 0x49a   : > { %v1203_v1 = vsub.f32 1.0, %v1202_v53  ;;  %v958_v27 = vor.u32 1.1754944e-38, %v957_v16  ;;  %vm956_vm13 = vcmp.eq.f32.partialorder %v955_v21, 8.507059e+37  ;;  %vm2323_vm14 = vmor %vm1206_vm12, %vm1207_vm10  ;;  %1269 = vmatpush.msra.mxu3 %v1264_v40  ;;  %v1261_v53 = vld [vmem:[#allocation14 + $0x60] sm:$0xff]  ;;  %vm1246_vm10 = vcmask 1048448  }
 0x49b   : > { %v779_v61 = vmul.f32 %v1639_v52, %v778_v58  ;;  %v1262_v58 = vld [vmem:[#allocation14 + $0x68] sm:$0xff] }
 0x49c   : > { %v1204_v14 = vmul.f32 %v2310_v56, %v1203_v1  ;;  %v1256_v1 = vld [vmem:[#allocation14 + $0x38] sm:$0xff] }
 0x49d   : > { %v780_v63 = vadd.f32 %v1639_v52, %v779_v61 }
 0x49e   : > { %v1643_v0 = vpop.eup %1642  ;;  %v1205_v25 = vadd.f32 %v2310_v56, %v1204_v14 }
 0x49f   : > { %v784_v6 = vsel %vm783_vm3, %v1639_v52, %v780_v63  ;;  %v947_v7 = vmul.f32 %v1643_v0, %v945_v57  ;;  %v1115_v12 = vpop.xlane.xlu2 %1114  ;;  %vm952_vm7 = vweird.f32 %v1643_v0  ;;  %v1263_v57 = vld [vmem:[#allocation14 + $0x70] sm:$0xff]  ;;  %v1258_v63 = vld [vmem:[#allocation14 + $0x48] sm:$0xff] }
 0x4a0   : > { %v789_v11 = vsel %vm786_vm4, %v788_v4, %v784_v6  ;;  %1644 = vrcp.f32 %v1115_v12  ;;  %vm953_vm11 = vmor %vm951_vm9, %vm952_vm7  ;;  %v1209_v37 = vsel %vm2323_vm14, %v2310_v56, %v1205_v25  ;;  %v1127_v41 = vand.u32 2147483648, %v1115_v12  ;;  %1270 = vmatpush.msra.mxu3 %v1263_v57  ;;  %v1254_v4 = vld [vmem:[#allocation14 + $0x28] sm:$0xff]  ;;  %v1252_v6 = vld [vmem:[#allocation14 + $0x18] sm:$0xff] }
 0x4a1   : > { %v948_v13 = vsub.f32 1.0, %v947_v7  ;;  %v790_v18 = vmul.f32 %v2288_v10, %v789_v11  ;;  %v1212_v10 = vand.u32 2147483648, %v2286_v8  ;;  %v1125_v42 = vand.u32 2147483647, %v1115_v12  ;;  %v1251_v7 = vld [vmem:[#allocation14 + $0x10] sm:$0xff]  ;;  %v1249_v11 = vld [vmem:[#allocation14] sm:$0xff] }
 0x4a2   : > { %v1217_v39 = vpop.permute.xlu0 %1216  ;;  %vm1121_vm3 = vweird.f32 %v1115_v12  ;;  %1271 = vmatpush.msra.mxu3 %v1262_v58  ;;  %vm991_vm7 = vcmask 654848   ;;  %vm1161_vm9 = vcmask 917248  }
 0x4a3   : > { %v949_v20 = vmul.f32 %v1643_v0, %v948_v13  ;;  %1487 = vmatmul.msk.f32.vlgmr.msra.gmra.mxu0 %vm603_vm1, %v790_v18  ;;  %v1213_v8 = vor.u32 1.1754944e-38, %v1212_v10  ;;  %vm1126_vm5 = vcmp.eq.f32.partialorder %v1125_v42, 8.507059e+37  ;;  %v1613_v18 = vld [vmem:[%s2388_s7] ss:$0 sm:$0xff] }
 0x4a4   : > { %1152 = vmatpush.msra.mxu0 %v1132_v22  ;;  %1272 = vmatpush.msra.mxu3 %v1261_v53 }
 0x4a5   : > { %v950_v24 = vadd.f32 %v1643_v0, %v949_v20  ;;  %v1214_v43 = vsel %vm1211_vm15, %v1213_v8, %v1209_v37 }
 0x4a6   : > { %v1645_v28 = vpop.eup %1644  ;;  %v1215_v47 = vmul.f32 %v2266_v54, %v1214_v43  ;;  %1273 = vmatpush.msra.mxu3 %v1260_v59 }
 0x4a7   : > { %v954_v29 = vsel %vm953_vm11, %v1643_v0, %v950_v24  ;;  %v1117_v32 = vmul.f32 %v1645_v28, %v1115_v12  ;;  %v1047_v33 = vpop.permute.xlu2 %1046  ;;  %vm1122_vm2 = vweird.f32 %v1645_v28  ;;  %v1257_v0 = vld [vmem:[#allocation14 + $0x40] sm:$0xff] }
 0x4a8   : > { %v959_v31 = vsel %vm956_vm13, %v958_v27, %v954_v29  ;;  %1067 = vmatpush.msrb.mxu2 %v1047_v33  ;;  %vm1123_vm4 = vmor %vm1121_vm3, %vm1122_vm2  ;;  %1274 = vmatpush.msra.mxu3 %v1259_v60 }
 0x4a9   : > { %v960_v36 = vmul.f32 %v2292_v17, %v959_v31  ;;  %v1118_v38 = vsub.f32 1.0, %v1117_v32  ;;  %1496 = vmatmul.msk.f32.vlgmr.msrb.gmra.mxu2 %vm603_vm1, %v1045_v34  ;;  %v1128_v17 = vor.u32 1.1754944e-38, %v1127_v41 }
 0x4aa   : > { %1237 = vmatpush.msra.mxu2 %v1217_v39  ;;  %v734_v51 = vpop.permute.xlu0 %733  ;;  %1275 = vmatpush.msra.mxu3 %v1258_v63 }
 0x4ab   : > { %v1119_v2 = vmul.f32 %v1645_v28, %v1118_v38  ;;  %1493 = vmatmul.msk.f32.vlgmr.msrb.gmra.mxu0 %vm603_vm1, %v960_v36 }
 0x4ac   : > { %1276 = vmatpush.msra.mxu3 %v1257_v0 }
 0x4ad   : > { %v1120_v44 = vadd.f32 %v1645_v28, %v1119_v2 }
 0x4ae   : > { %1277 = vmatpush.msra.mxu3 %v1256_v1 }
 0x4af   : > { %v1124_v46 = vsel %vm1123_vm4, %v1645_v28, %v1120_v44 }
 0x4b0   : > { %v1129_v48 = vsel %vm1126_vm5, %v1128_v17, %v1124_v46  ;;  %1278 = vmatpush.msra.mxu3 %v1255_v3 }
 0x4b1   : > { %1502 = vmatmul.msk.f32.vlgmr.msra.gmra.mxu2 %vm603_vm1, %v1215_v47  ;;  %v1130_v49 = vmul.f32 %v2296_v26, %v1129_v48 }
 0x4b2   : > { %1279 = vmatpush.msra.mxu3 %v1254_v4 }
 0x4b3   : > { %1499 = vmatmul.msk.f32.vlgmr.msra.gmra.mxu0 %vm603_vm1, %v1130_v49  ;;  %vm906_vm1 = vcmask 523648  }
 0x4b4   : > { %1280 = vmatpush.msra.mxu3 %v1253_v5 }
 0x4b6   : > { %v648_v50 = vpop.f32.mrf.mxu2  ;;  %1281 = vmatpush.msra.mxu3 %v1252_v6 }
 0x4b7   : > { %651 = vst.msk [vmem:[#allocation2] sm:$0xff] %vm575_vm0, %v648_v50  ;;  %vm821_vm0 = vcmask 392448  }
 0x4b8   : > { %737 = vst.msk [vmem:[#allocation2] sm:$0xff] %vm736_vm6, %v734_v51  ;;  %1282 = vmatpush.msra.mxu3 %v1251_v7 }
 0x4ba   : > { %1283 = vmatpush.msra.mxu3 %v1250_v9 }
 0x4bc   : > { %1284 = vmatpush.msra.mxu3 %v1249_v11 }
 0x4c4   : > { %v899_v45 = vpop.f32.mrf.mxu2 }
 0x4c5   : > { %903 = vrot.lane.b32.xlu1 %v899_v45, %s1946_s25 }
 0x520   : > { %v814_v52 = vpop.f32.mrf.mxu0 }
 0x521   : > { %818 = vrot.lane.b32.xlu2 %v814_v52, %s1947_s1 }
 0x528   : > { %v984_v54 = vpop.f32.mrf.mxu0 }
 0x529   : > { %988 = vrot.lane.b32.xlu0 %v984_v54, %s1945_s10 }
 0x52c   : > { %v1069_v55 = vpop.f32.mrf.mxu2 }
 0x52d   : > { %1073 = vrot.lane.b32.xlu2 %v1069_v55, %s1944_s24 }
 0x530   : > { %v1154_v26 = vpop.f32.mrf.mxu0 }
 0x531   : > { %1158 = vrot.lane.b32.xlu1 %v1154_v26, %s1943_s21  ;;  %s1876_s21 = scalar_lea.hbm %s2389_s8, 16 }
 0x532   : > { %p1878_p10 = scmp.lt.s32.totalorder %s1876_s21, %s1872_s12 }
 0x534   : > { %v1239_v56 = vpop.f32.mrf.mxu2  ;;  %p1879_p6 = por %p1878_p10, %p1877_p8 }
 0x535   : > { %1243 = vrot.lane.b32.xlu0 %v1239_v56, %s1942_s11 }
 0x536   : > { %p1880_p11 = pnand %p1879_p6, %p1875_p1 }
 0x537   : > { %v904_v62 = vpop.permute.xlu1 %903 }
 0x57b   : > { %v819_v61 = vpop.permute.xlu2 %818 }
 0x57c   : > { %822 = vst.msk [vmem:[#allocation2] sm:$0xff] %vm821_vm0, %v819_v61 }
 0x57d   : > { %907 = vst.msk [vmem:[#allocation2] sm:$0xff] %vm906_vm1, %v904_v62 }
 0x587   : > { %v1074_v13 = vpop.permute.xlu2 %1073 }
 0x59b   : > { %v989_v12 = vpop.permute.xlu0 %988 }
 0x59c   : > { %992 = vst.msk [vmem:[#allocation2] sm:$0xff] %vm991_vm7, %v989_v12 }
 0x59d   : > { %1077 = vst.msk [vmem:[#allocation2] sm:$0xff] %vm1076_vm8, %v1074_v13 }
 0x5a3   : > { %v1159_v14 = vpop.permute.xlu1 %1158 }
 0x5a4   : > { %1162 = vst.msk [vmem:[#allocation2] sm:$0xff] %vm1161_vm9, %v1159_v14 }
 0x5a7   : > { %v1244_v15 = vpop.permute.xlu0 %1243 }
 0x5a8   : > { %1247 = vst.msk [vmem:[#allocation2] sm:$0xff] %vm1246_vm10, %v1244_v15 }
 0x5af   : > { %v1248_v16 = vld [vmem:[#allocation2] sm:$0xff] }
 0x5b0   : > { %1285 = vmatmul.f32.vlgmr.msra.gmra.mxu3 %v1248_v16 }
 0x633   : > { %v1286_v19 = vpop.f32.mrf.mxu3 }
 0x634   : > { %v1287_v20 = vadd.f32 %v1613_v18, %v1286_v19 }
 0x636   : > { %1289 = vst [vmem:[%s463_s23] sm:$0xff] %v1287_v20 }
 0x637   : > { %1883 = shalt.err (!%p1880_p11)
}
 0x638   : > { %1529 = dma.vmem_to_hbm [thread:$0]  (%p2073_p4), %s1304_s22, 128, %s1306_s13, %s1291_s14  }
 0x639 PF: > { %s2427_s17 = sld [smem:[#allocation21_spill]]  ;;  %s1317_s10 = sand.u32 1, %s1922_s27  }
 0x63a   : > { %s1318_s25 = scalar_lea.sflag [#allocation5], %s1317_s10 }
 0x63f   : > { %p2428_p13 = scmp.ge.s32.totalorder %s2427_s17, 2 }
 0x641   : > { %p1555_p3 = pnand %p2428_p13, %p2077_p5 }
 0x643   : > { %p1556_p7 = pneg %p1555_p3 }
 0x645   : > { %1917 = dma.done.wait (%p1556_p7), %s1318_s25, 128  }
 0x646   : > { %1919 = vsyncadd (%p1556_p7), %s1318_s25, 4294967168  ;;  %s2429_s30 = sld [smem:[#allocation22_spill]]  ;;  %s2431_s27 = smov %s1926_s28 }
 0x647   : > { %s2430_s1 = sld [smem:[#allocation23_spill]]  ;;  %s2432_s28 = smov %s1930_s29 }
 0x64c   : > { %p26_p9 = scmp.ge.s32.totalorder %s2429_s30, 4  }
 0x64d   : > { %s2433_s29 = smov %s2430_s1 }
 0x64e   :  { %28 = sbr.rel (!%p26_p9) target bundleno = 15 (0xf), region = 137 }
 0x653   :  { %1324 = vsyncpa [#allocation4], 1 }
 0x654   :  { %1326 = vsyncpa [#allocation4 + $0x1], 1 }
 0x655   :  { %1327 = vsyncpa [#allocation7], 1 }
 0x656   :  { %1329 = vsyncpa [#allocation7 + $0x1], 1 }
 0x657   :  { %1330 = vsyncpa [#allocation10], 1 }
 0x658   :  { %1331 = vsyncpa [#allocation13], 1 }
 0x659   :  { %1332 = vsyncpa [#allocation5], 1 }
 0x65a   :  { %1334 = vsyncpa [#allocation5 + $0x1], 1 }

</bundles_post_ra>
